<compile_context>
chip_gen: v5e
topology: v5e:2x2
jax: 0.10.0
libtpu: 0.0.40
codegen_flags: <defaults>
</compile_context>

<pallas_src>
import functools
import math

import jax
import jax.numpy as jnp
from jax.experimental import pallas as pl
from jax.experimental.pallas import tpu as pltpu


_MAX_SINGLE_STEP_K = 8192            # K strips up to this stay a single block
_VMEM_LIMIT = 48 * 1024 * 1024       # fits v5e/v6e (128 MiB) and v7x (64 MiB)


def _round_up(x, m):
    return ((x + m - 1) // m) * m


def _pick_tm(m):
    """M-tile: big enough to amortize grid overhead, >=2 tiles when possible."""
    if m <= 16:
        return m                      # block == full dim (always legal)
    if m >= 2048:
        return 512
    if m >= 512:
        return 256
    half = -(-m // 2)                 # aim for >= 2 blocks (v7x has 2 TCs)
    return min(256, _round_up(half, 16))


# --------------------------------------------------------------------------
# Fused (matmul + bias + optional LeakyReLU) Pallas kernels
# --------------------------------------------------------------------------
def _fused_matmul_k1_kernel(x_ref, w_ref, b_ref, o_ref, *, leaky, neg_slope):
    """Single reduction step: whole K strip in one block, no scratch."""
    y = jnp.dot(x_ref[...], w_ref[...], preferred_element_type=jnp.float32)
    y = y + b_ref[...]                       # bias (1, tn) broadcasts
    if leaky:
        y = jnp.where(y >= 0.0, y, neg_slope * y)
    o_ref[...] = y.astype(o_ref.dtype)


def _fused_matmul_acc_kernel(x_ref, w_ref, b_ref, o_ref, acc_ref,
                             *, leaky, neg_slope):
    """Fallback for very large K (not hit by this model): tiled reduction."""
    k = pl.program_id(2)

    @pl.when(k == 0)
    def _():
        acc_ref[...] = jnp.zeros_like(acc_ref)

    acc_ref[...] += jnp.dot(x_ref[...], w_ref[...],
                            preferred_element_type=jnp.float32)

    @pl.when(k == pl.num_programs(2) - 1)
    def _():
        y = acc_ref[...] + b_ref[...]
        if leaky:
            y = jnp.where(y >= 0.0, y, neg_slope * y)
        o_ref[...] = y.astype(o_ref.dtype)


def fused_matmul(x, w, b, *, leaky=True, neg_slope=0.2, out_dtype=jnp.float32):
    """y = leaky_relu(x @ w + b).  x:(M,K), w:(K,N) (BN already folded), b:(N,)."""
    M, K = x.shape
    K2, N = w.shape
    assert K == K2

    x = x.astype(jnp.bfloat16)                   # MXU-native operands
    w = w.astype(jnp.bfloat16)
    b2 = b.astype(jnp.float32).reshape(1, N)

    tm = _pick_tm(M)
    tn = N if N <= 256 else 256

    if K <= _MAX_SINGLE_STEP_K:
        kernel = functools.partial(_fused_matmul_k1_kernel,
                                   leaky=leaky, neg_slope=neg_slope)
        return pl.pallas_call(
            kernel,
            out_shape=jax.ShapeDtypeStruct((M, N), out_dtype),
            grid_spec=pltpu.PrefetchScalarGridSpec(
                num_scalar_prefetch=0,
                grid=(pl.cdiv(M, tm), pl.cdiv(N, tn)),
                in_specs=[
                    pl.BlockSpec((tm, K), lambda i, j: (i, 0)),
                    pl.BlockSpec((K, tn), lambda i, j: (0, j)),
                    pl.BlockSpec((1, tn), lambda i, j: (0, j)),
                ],
                out_specs=pl.BlockSpec((tm, tn), lambda i, j: (i, j)),
            ),
            compiler_params=pltpu.CompilerParams(
                dimension_semantics=("parallel", "parallel"),
                vmem_limit_bytes=_VMEM_LIMIT),
        )(x, w, b2)

    # ---- large-K fallback: tiled reduction axis (K zero-padded to tk) ----
    tk = 512
    Kp = _round_up(K, tk)
    xp = jnp.pad(x, ((0, 0), (0, Kp - K)))
    wp = jnp.pad(w, ((0, Kp - K), (0, 0)))
    kernel = functools.partial(_fused_matmul_acc_kernel,
                               leaky=leaky, neg_slope=neg_slope)
    return pl.pallas_call(
        kernel,
        out_shape=jax.ShapeDtypeStruct((M, N), out_dtype),
        grid_spec=pltpu.PrefetchScalarGridSpec(
            num_scalar_prefetch=0,
            grid=(pl.cdiv(M, tm), pl.cdiv(N, tn), Kp // tk),
            in_specs=[
                pl.BlockSpec((tm, tk), lambda i, j, k: (i, k)),
                pl.BlockSpec((tk, tn), lambda i, j, k: (k, j)),
                pl.BlockSpec((1, tn), lambda i, j, k: (0, j)),
            ],
            out_specs=pl.BlockSpec((tm, tn), lambda i, j, k: (i, j)),
            scratch_shapes=[pltpu.VMEM((tm, tn), jnp.float32)],
        ),
        compiler_params=pltpu.CompilerParams(
            dimension_semantics=("parallel", "parallel", "arbitrary"),
            vmem_limit_bytes=_VMEM_LIMIT),
    )(xp, wp, b2)


# --------------------------------------------------------------------------
# Conv block = im2col (glue, bf16) + fused Pallas matmul
# --------------------------------------------------------------------------
def conv_block_forward(x_nhwc, blk):
    """x_nhwc: (N, H, W, Cin) -> (N, Ho, Wo, Cout), bf16 activations."""
    kh, kw, stride = blk["kh"], blk["kw"], blk["stride"]
    Cin, Cout = blk["cin"], blk["cout"]
    N, H, W, _ = x_nhwc.shape
    pad = kh // 2
    Ho = (H + 2 * pad - kh) // stride + 1
    Wo = (W + 2 * pad - kw) // stride + 1

    xp = jnp.pad(x_nhwc.astype(jnp.bfloat16),
                 ((0, 0), (pad, pad), (pad, pad), (0, 0)))
    cols = []
    for ky in range(kh):
        for kx in range(kw):
            cols.append(xp[:,
                           ky: ky + stride * (Ho - 1) + 1: stride,
                           kx: kx + stride * (Wo - 1) + 1: stride,
                           :])
    patches = jnp.concatenate(cols, axis=-1)          # (N, Ho, Wo, kh*kw*Cin)
    patches = patches.reshape(N * Ho * Wo, kh * kw * Cin)

    y = fused_matmul(patches, blk["w_mat"], blk["b"],
                     leaky=True, neg_slope=0.2, out_dtype=jnp.bfloat16)
    return y.reshape(N, Ho, Wo, Cout)


def adaptive_avg_pool_nhwc(x, out_hw):
    """PyTorch AdaptiveAvgPool2d semantics on NHWC (glue: tiny reduction)."""
    N, H, W, C = x.shape
    oh, ow = out_hw
    rows = []
    for i in range(oh):
        hs, he = (i * H) // oh, -((-(i + 1) * H) // oh)
        cols = []
        for j in range(ow):
            ws, we = (j * W) // ow, -((-(j + 1) * W) // ow)
            cols.append(jnp.mean(x[:, hs:he, ws:we, :], axis=(1, 2)))
        rows.append(jnp.stack(cols, axis=1))
    return jnp.stack(rows, axis=1)                    # (N, oh, ow, C)


# --------------------------------------------------------------------------
# Parameter init (deterministic, mirrors the PyTorch constructor loop)
# --------------------------------------------------------------------------
def init_discriminator_params(key, kernel_size=3, n_channels=64, n_blocks=8,
                              fc_size=1024):
    params = {"conv_blocks": []}
    in_c = 3
    out_c = in_c
    for i in range(n_blocks):
        out_c = (n_channels if i == 0 else in_c * 2) if i % 2 == 0 else in_c
        stride = 1 if i % 2 == 0 else 2
        key, kw_, kb_ = jax.random.split(key, 3)
        fan_in = in_c * kernel_size * kernel_size
        bound = 1.0 / math.sqrt(fan_in)
        blk = {
            "w": jax.random.uniform(kw_, (out_c, in_c, kernel_size, kernel_size),
                                    jnp.float32, -bound, bound),
            "b": jax.random.uniform(kb_, (out_c,), jnp.float32, -bound, bound),
            "stride": stride,
            "bn": i != 0,
        }
        if blk["bn"]:
            blk["bn_gamma"] = jnp.ones((out_c,), jnp.float32)
            blk["bn_beta"] = jnp.zeros((out_c,), jnp.float32)
            blk["bn_mean"] = jnp.zeros((out_c,), jnp.float32)
            blk["bn_var"] = jnp.ones((out_c,), jnp.float32)
        params["conv_blocks"].append(blk)
        in_c = out_c

    fc_in = out_c * 6 * 6
    key, k1, k2, k3, k4 = jax.random.split(key, 5)
    b1 = 1.0 / math.sqrt(fc_in)
    b2 = 1.0 / math.sqrt(fc_size)
    params["fc1_w"] = jax.random.uniform(k1, (fc_size, fc_in), jnp.float32, -b1, b1)
    params["fc1_b"] = jax.random.uniform(k2, (fc_size,), jnp.float32, -b1, b1)
    params["fc2_w"] = jax.random.uniform(k3, (1, fc_size), jnp.float32, -b2, b2)
    params["fc2_b"] = jax.random.uniform(k4, (1,), jnp.float32, -b2, b2)
    return params


def prepare_inference_params(params, eps=1e-5):
    """Fold BN into the conv weights/bias, pre-transpose, cast MXU operands."""
    prepared = {"conv_blocks": []}
    for blk in params["conv_blocks"]:
        w, b = blk["w"], blk["b"]                  # (Cout, Cin, kh, kw), (Cout,)
        Cout, Cin, kh, kw = w.shape
        # (kh*kw*Cin, Cout), matching patch ordering ((ky,kx) outer, cin inner)
        w_mat = jnp.transpose(w, (2, 3, 1, 0)).reshape(kh * kw * Cin, Cout)
        if blk["bn"]:
            inv_std = 1.0 / jnp.sqrt(blk["bn_var"] + eps)
            scale = blk["bn_gamma"] * inv_std
            shift = blk["bn_beta"] - blk["bn_mean"] * scale
            w_mat = w_mat * scale[None, :]         # fold BN into weights
            b = b * scale + shift                  # and into the bias
        prepared["conv_blocks"].append({
            "w_mat": w_mat.astype(jnp.bfloat16),
            "b": b.astype(jnp.float32),
            "stride": blk["stride"],
            "kh": kh, "kw": kw, "cin": Cin, "cout": Cout,
        })
    prepared["fc1_w"] = params["fc1_w"].T.astype(jnp.bfloat16)   # (fc_in, fc_size)
    prepared["fc1_b"] = params["fc1_b"].astype(jnp.float32)
    prepared["fc2_w"] = params["fc2_w"].T.astype(jnp.float32)    # (fc_size, 1)
    prepared["fc2_b"] = params["fc2_b"].astype(jnp.float32)
    return prepared


# --------------------------------------------------------------------------
# Full forward pass
# --------------------------------------------------------------------------
def discriminator_forward(imgs_nchw, prepared):
    N = imgs_nchw.shape[0]
    x = jnp.transpose(imgs_nchw, (0, 2, 3, 1))        # NCHW -> NHWC

    for blk in prepared["conv_blocks"]:
        x = conv_block_forward(x, blk)

    pooled = adaptive_avg_pool_nhwc(x.astype(jnp.float32), (6, 6))  # (N,6,6,C)
    # match PyTorch flatten order of (N, C, 6, 6).view(N, -1)
    flat = jnp.transpose(pooled, (0, 3, 1, 2)).reshape(N, -1)

    h = fused_matmul(flat, prepared["fc1_w"], prepared["fc1_b"],
                     leaky=True, neg_slope=0.2, out_dtype=jnp.float32)

    # fc2 (out_features = 1): one output lane - not worth an MXU tile, keep in XLA.
    logit = h @ prepared["fc2_w"] + prepared["fc2_b"]
    return logit                                      # (N, 1)


if __name__ == "__main__":
    key = jax.random.PRNGKey(0)
    kp, kx = jax.random.split(key)

    # small config consistent with the module's constructor
    kernel_size, n_channels, n_blocks, fc_size = 3, 8, 4, 32
    params = init_discriminator_params(kp, kernel_size=kernel_size,
                                       n_channels=n_channels,
                                       n_blocks=n_blocks, fc_size=fc_size)
    prepared = prepare_inference_params(params)

    # (N, 3, H, W); H=W=24 so that 2 stride-2 blocks land exactly on 6x6
    imgs = jax.random.normal(kx, (2, 3, 24, 24), jnp.float32)

    fwd = jax.jit(lambda im: discriminator_forward(im, prepared))
    logit = fwd(imgs)
    jax.block_until_ready(logit)
    assert logit.shape == (2, 1)
    print("KERNEL_OK")
</pallas_src>

<mosaic_0001>
module attributes {stable_mosaic.version = 11 : i64} {
  func.func @_fused_matmul_k1_kernel(%arg0: i32, %arg1: i32, %arg2: memref<256x27xbf16, #tpu.memory_space<vmem>>, %arg3: memref<27x8xbf16, #tpu.memory_space<vmem>>, %arg4: memref<1x8xf32, #tpu.memory_space<vmem>>, %arg5: memref<256x8xbf16, #tpu.memory_space<vmem>>) attributes {dimension_semantics = [#tpu.dimension_semantics<parallel>, #tpu.dimension_semantics<parallel>], iteration_bounds = array<i64: 5, 1>, scalar_prefetch = 0 : i64, scratch_operands = 0 : i64, tpu.core_type = #tpu.core_type<tc>, window_params = [{transform_indices = @transform_0, window_bounds = array<i64: 256, 27>}, {transform_indices = @transform_1, window_bounds = array<i64: 27, 8>}, {transform_indices = @transform_2, window_bounds = array<i64: 1, 8>}, {transform_indices = @transform_3, window_bounds = array<i64: 256, 8>}]} {
    %c0 = arith.constant 0 : index
    %c0_0 = arith.constant 0 : index
    %0 = vector.load %arg2[%c0, %c0_0] : memref<256x27xbf16, #tpu.memory_space<vmem>>, vector<256x27xbf16>
    %c0_1 = arith.constant 0 : index
    %c0_2 = arith.constant 0 : index
    %1 = vector.load %arg3[%c0_1, %c0_2] : memref<27x8xbf16, #tpu.memory_space<vmem>>, vector<27x8xbf16>
    %cst = arith.constant dense<0.000000e+00> : vector<256x8xf32>
    %2 = tpu.matmul %0, %1, %cst {dimension_numbers = #tpu.dot_dimension_numbers<[1], [0], [0], [1], [0, 0, 1, 1], [], []>} : vector<256x27xbf16>, vector<27x8xbf16>, vector<256x8xf32> -> vector<256x8xf32>
    %c0_3 = arith.constant 0 : index
    %c0_4 = arith.constant 0 : index
    %3 = vector.load %arg4[%c0_3, %c0_4] : memref<1x8xf32, #tpu.memory_space<vmem>>, vector<1x8xf32>
    %4 = vector.broadcast %3 : vector<1x8xf32> to vector<256x8xf32>
    %5 = arith.addf %2, %4 : vector<256x8xf32>
    %cst_5 = arith.constant 0.000000e+00 : f32
    %6 = vector.broadcast %cst_5 : f32 to vector<256x8xf32>
    %7 = arith.cmpf oge, %5, %6 : vector<256x8xf32>
    %cst_6 = arith.constant 2.000000e-01 : f32
    %8 = vector.broadcast %cst_6 : f32 to vector<256x8xf32>
    %9 = arith.mulf %8, %5 : vector<256x8xf32>
    %10 = arith.select %7, %5, %9 : vector<256x8xi1>, vector<256x8xf32>
    %11 = arith.truncf %10 : vector<256x8xf32> to vector<256x8xbf16>
    %c0_7 = arith.constant 0 : index
    %c0_8 = arith.constant 0 : index
    %12 = vector.load %arg5[%c0_7, %c0_8] : memref<256x8xbf16, #tpu.memory_space<vmem>>, vector<256x8xbf16>
    tpu.vector_store %arg5[%c0_7, %c0_8], %11 {strides = array<i32>} : memref<256x8xbf16, #tpu.memory_space<vmem>>, vector<256x8xbf16>,
    return
  }
  func.func @transform_0(%arg0: i32, %arg1: i32) -> (i32, i32) {
    %c0_i32 = arith.constant 0 : i32
    %c0_i32_0 = arith.constant 0 : i32
    return %arg0, %c0_i32 : i32, i32
  }
  func.func @transform_1(%arg0: i32, %arg1: i32) -> (i32, i32) {
    %c0_i32 = arith.constant 0 : i32
    %c0_i32_0 = arith.constant 0 : i32
    return %c0_i32, %arg1 : i32, i32
  }
  func.func @transform_2(%arg0: i32, %arg1: i32) -> (i32, i32) {
    %c0_i32 = arith.constant 0 : i32
    %c0_i32_0 = arith.constant 0 : i32
    return %c0_i32, %arg1 : i32, i32
  }
  func.func @transform_3(%arg0: i32, %arg1: i32) -> (i32, i32) {
    %c0_i32 = arith.constant 0 : i32
    return %arg0, %arg1 : i32, i32
  }
}

module attributes {stable_mosaic.version = 11 : i64} {
  func.func @_fused_matmul_k1_kernel(%arg0: i32, %arg1: i32, %arg2: memref<144x72xbf16, #tpu.memory_space<vmem>>, %arg3: memref<72x8xbf16, #tpu.memory_space<vmem>>, %arg4: memref<1x8xf32, #tpu.memory_space<vmem>>, %arg5: memref<144x8xbf16, #tpu.memory_space<vmem>>) attributes {dimension_semantics = [#tpu.dimension_semantics<parallel>, #tpu.dimension_semantics<parallel>], iteration_bounds = array<i64: 2, 1>, scalar_prefetch = 0 : i64, scratch_operands = 0 : i64, tpu.core_type = #tpu.core_type<tc>, window_params = [{transform_indices = @transform_0, window_bounds = array<i64: 144, 72>}, {transform_indices = @transform_1, window_bounds = array<i64: 72, 8>}, {transform_indices = @transform_2, window_bounds = array<i64: 1, 8>}, {transform_indices = @transform_3, window_bounds = array<i64: 144, 8>}]} {
    %c0 = arith.constant 0 : index
    %c0_0 = arith.constant 0 : index
    %0 = vector.load %arg2[%c0, %c0_0] : memref<144x72xbf16, #tpu.memory_space<vmem>>, vector<144x72xbf16>
    %c0_1 = arith.constant 0 : index
    %c0_2 = arith.constant 0 : index
    %1 = vector.load %arg3[%c0_1, %c0_2] : memref<72x8xbf16, #tpu.memory_space<vmem>>, vector<72x8xbf16>
    %cst = arith.constant dense<0.000000e+00> : vector<144x8xf32>
    %2 = tpu.matmul %0, %1, %cst {dimension_numbers = #tpu.dot_dimension_numbers<[1], [0], [0], [1], [0, 0, 1, 1], [], []>} : vector<144x72xbf16>, vector<72x8xbf16>, vector<144x8xf32> -> vector<144x8xf32>
    %c0_3 = arith.constant 0 : index
    %c0_4 = arith.constant 0 : index
    %3 = vector.load %arg4[%c0_3, %c0_4] : memref<1x8xf32, #tpu.memory_space<vmem>>, vector<1x8xf32>
    %4 = vector.broadcast %3 : vector<1x8xf32> to vector<144x8xf32>
    %5 = arith.addf %2, %4 : vector<144x8xf32>
    %cst_5 = arith.constant 0.000000e+00 : f32
    %6 = vector.broadcast %cst_5 : f32 to vector<144x8xf32>
    %7 = arith.cmpf oge, %5, %6 : vector<144x8xf32>
    %cst_6 = arith.constant 2.000000e-01 : f32
    %8 = vector.broadcast %cst_6 : f32 to vector<144x8xf32>
    %9 = arith.mulf %8, %5 : vector<144x8xf32>
    %10 = arith.select %7, %5, %9 : vector<144x8xi1>, vector<144x8xf32>
    %11 = arith.truncf %10 : vector<144x8xf32> to vector<144x8xbf16>
    %c0_7 = arith.constant 0 : index
    %c0_8 = arith.constant 0 : index
    %12 = vector.load %arg5[%c0_7, %c0_8] : memref<144x8xbf16, #tpu.memory_space<vmem>>, vector<144x8xbf16>
    tpu.vector_store %arg5[%c0_7, %c0_8], %11 {strides = array<i32>} : memref<144x8xbf16, #tpu.memory_space<vmem>>, vector<144x8xbf16>,
    return
  }
  func.func @transform_0(%arg0: i32, %arg1: i32) -> (i32, i32) {
    %c0_i32 = arith.constant 0 : i32
    %c0_i32_0 = arith.constant 0 : i32
    return %arg0, %c0_i32 : i32, i32
  }
  func.func @transform_1(%arg0: i32, %arg1: i32) -> (i32, i32) {
    %c0_i32 = arith.constant 0 : i32
    %c0_i32_0 = arith.constant 0 : i32
    return %c0_i32, %arg1 : i32, i32
  }
  func.func @transform_2(%arg0: i32, %arg1: i32) -> (i32, i32) {
    %c0_i32 = arith.constant 0 : i32
    %c0_i32_0 = arith.constant 0 : i32
    return %c0_i32, %arg1 : i32, i32
  }
  func.func @transform_3(%arg0: i32, %arg1: i32) -> (i32, i32) {
    %c0_i32 = arith.constant 0 : i32
    return %arg0, %arg1 : i32, i32
  }
}

module attributes {stable_mosaic.version = 11 : i64} {
  func.func @_fused_matmul_k1_kernel(%arg0: i32, %arg1: i32, %arg2: memref<144x72xbf16, #tpu.memory_space<vmem>>, %arg3: memref<72x16xbf16, #tpu.memory_space<vmem>>, %arg4: memref<1x16xf32, #tpu.memory_space<vmem>>, %arg5: memref<144x16xbf16, #tpu.memory_space<vmem>>) attributes {dimension_semantics = [#tpu.dimension_semantics<parallel>, #tpu.dimension_semantics<parallel>], iteration_bounds = array<i64: 2, 1>, scalar_prefetch = 0 : i64, scratch_operands = 0 : i64, tpu.core_type = #tpu.core_type<tc>, window_params = [{transform_indices = @transform_0, window_bounds = array<i64: 144, 72>}, {transform_indices = @transform_1, window_bounds = array<i64: 72, 16>}, {transform_indices = @transform_2, window_bounds = array<i64: 1, 16>}, {transform_indices = @transform_3, window_bounds = array<i64: 144, 16>}]} {
    %c0 = arith.constant 0 : index
    %c0_0 = arith.constant 0 : index
    %0 = vector.load %arg2[%c0, %c0_0] : memref<144x72xbf16, #tpu.memory_space<vmem>>, vector<144x72xbf16>
    %c0_1 = arith.constant 0 : index
    %c0_2 = arith.constant 0 : index
    %1 = vector.load %arg3[%c0_1, %c0_2] : memref<72x16xbf16, #tpu.memory_space<vmem>>, vector<72x16xbf16>
    %cst = arith.constant dense<0.000000e+00> : vector<144x16xf32>
    %2 = tpu.matmul %0, %1, %cst {dimension_numbers = #tpu.dot_dimension_numbers<[1], [0], [0], [1], [0, 0, 1, 1], [], []>} : vector<144x72xbf16>, vector<72x16xbf16>, vector<144x16xf32> -> vector<144x16xf32>
    %c0_3 = arith.constant 0 : index
    %c0_4 = arith.constant 0 : index
    %3 = vector.load %arg4[%c0_3, %c0_4] : memref<1x16xf32, #tpu.memory_space<vmem>>, vector<1x16xf32>
    %4 = vector.broadcast %3 : vector<1x16xf32> to vector<144x16xf32>
    %5 = arith.addf %2, %4 : vector<144x16xf32>
    %cst_5 = arith.constant 0.000000e+00 : f32
    %6 = vector.broadcast %cst_5 : f32 to vector<144x16xf32>
    %7 = arith.cmpf oge, %5, %6 : vector<144x16xf32>
    %cst_6 = arith.constant 2.000000e-01 : f32
    %8 = vector.broadcast %cst_6 : f32 to vector<144x16xf32>
    %9 = arith.mulf %8, %5 : vector<144x16xf32>
    %10 = arith.select %7, %5, %9 : vector<144x16xi1>, vector<144x16xf32>
    %11 = arith.truncf %10 : vector<144x16xf32> to vector<144x16xbf16>
    %c0_7 = arith.constant 0 : index
    %c0_8 = arith.constant 0 : index
    %12 = vector.load %arg5[%c0_7, %c0_8] : memref<144x16xbf16, #tpu.memory_space<vmem>>, vector<144x16xbf16>
    tpu.vector_store %arg5[%c0_7, %c0_8], %11 {strides = array<i32>} : memref<144x16xbf16, #tpu.memory_space<vmem>>, vector<144x16xbf16>,
    return
  }
  func.func @transform_0(%arg0: i32, %arg1: i32) -> (i32, i32) {
    %c0_i32 = arith.constant 0 : i32
    %c0_i32_0 = arith.constant 0 : i32
    return %arg0, %c0_i32 : i32, i32
  }
  func.func @transform_1(%arg0: i32, %arg1: i32) -> (i32, i32) {
    %c0_i32 = arith.constant 0 : i32
    %c0_i32_0 = arith.constant 0 : i32
    return %c0_i32, %arg1 : i32, i32
  }
  func.func @transform_2(%arg0: i32, %arg1: i32) -> (i32, i32) {
    %c0_i32 = arith.constant 0 : i32
    %c0_i32_0 = arith.constant 0 : i32
    return %c0_i32, %arg1 : i32, i32
  }
  func.func @transform_3(%arg0: i32, %arg1: i32) -> (i32, i32) {
    %c0_i32 = arith.constant 0 : i32
    return %arg0, %arg1 : i32, i32
  }
}

module attributes {stable_mosaic.version = 11 : i64} {
  func.func @_fused_matmul_k1_kernel(%arg0: i32, %arg1: i32, %arg2: memref<48x144xbf16, #tpu.memory_space<vmem>>, %arg3: memref<144x16xbf16, #tpu.memory_space<vmem>>, %arg4: memref<1x16xf32, #tpu.memory_space<vmem>>, %arg5: memref<48x16xbf16, #tpu.memory_space<vmem>>) attributes {dimension_semantics = [#tpu.dimension_semantics<parallel>, #tpu.dimension_semantics<parallel>], iteration_bounds = array<i64: 2, 1>, scalar_prefetch = 0 : i64, scratch_operands = 0 : i64, tpu.core_type = #tpu.core_type<tc>, window_params = [{transform_indices = @transform_0, window_bounds = array<i64: 48, 144>}, {transform_indices = @transform_1, window_bounds = array<i64: 144, 16>}, {transform_indices = @transform_2, window_bounds = array<i64: 1, 16>}, {transform_indices = @transform_3, window_bounds = array<i64: 48, 16>}]} {
    %c0 = arith.constant 0 : index
    %c0_0 = arith.constant 0 : index
    %0 = vector.load %arg2[%c0, %c0_0] : memref<48x144xbf16, #tpu.memory_space<vmem>>, vector<48x144xbf16>
    %c0_1 = arith.constant 0 : index
    %c0_2 = arith.constant 0 : index
    %1 = vector.load %arg3[%c0_1, %c0_2] : memref<144x16xbf16, #tpu.memory_space<vmem>>, vector<144x16xbf16>
    %cst = arith.constant dense<0.000000e+00> : vector<48x16xf32>
    %2 = tpu.matmul %0, %1, %cst {dimension_numbers = #tpu.dot_dimension_numbers<[1], [0], [0], [1], [0, 0, 1, 1], [], []>} : vector<48x144xbf16>, vector<144x16xbf16>, vector<48x16xf32> -> vector<48x16xf32>
    %c0_3 = arith.constant 0 : index
    %c0_4 = arith.constant 0 : index
    %3 = vector.load %arg4[%c0_3, %c0_4] : memref<1x16xf32, #tpu.memory_space<vmem>>, vector<1x16xf32>
    %4 = vector.broadcast %3 : vector<1x16xf32> to vector<48x16xf32>
    %5 = arith.addf %2, %4 : vector<48x16xf32>
    %cst_5 = arith.constant 0.000000e+00 : f32
    %6 = vector.broadcast %cst_5 : f32 to vector<48x16xf32>
    %7 = arith.cmpf oge, %5, %6 : vector<48x16xf32>
    %cst_6 = arith.constant 2.000000e-01 : f32
    %8 = vector.broadcast %cst_6 : f32 to vector<48x16xf32>
    %9 = arith.mulf %8, %5 : vector<48x16xf32>
    %10 = arith.select %7, %5, %9 : vector<48x16xi1>, vector<48x16xf32>
    %11 = arith.truncf %10 : vector<48x16xf32> to vector<48x16xbf16>
    %c0_7 = arith.constant 0 : index
    %c0_8 = arith.constant 0 : index
    %12 = vector.load %arg5[%c0_7, %c0_8] : memref<48x16xbf16, #tpu.memory_space<vmem>>, vector<48x16xbf16>
    tpu.vector_store %arg5[%c0_7, %c0_8], %11 {strides = array<i32>} : memref<48x16xbf16, #tpu.memory_space<vmem>>, vector<48x16xbf16>,
    return
  }
  func.func @transform_0(%arg0: i32, %arg1: i32) -> (i32, i32) {
    %c0_i32 = arith.constant 0 : i32
    %c0_i32_0 = arith.constant 0 : i32
    return %arg0, %c0_i32 : i32, i32
  }
  func.func @transform_1(%arg0: i32, %arg1: i32) -> (i32, i32) {
    %c0_i32 = arith.constant 0 : i32
    %c0_i32_0 = arith.constant 0 : i32
    return %c0_i32, %arg1 : i32, i32
  }
  func.func @transform_2(%arg0: i32, %arg1: i32) -> (i32, i32) {
    %c0_i32 = arith.constant 0 : i32
    %c0_i32_0 = arith.constant 0 : i32
    return %c0_i32, %arg1 : i32, i32
  }
  func.func @transform_3(%arg0: i32, %arg1: i32) -> (i32, i32) {
    %c0_i32 = arith.constant 0 : i32
    return %arg0, %arg1 : i32, i32
  }
}

module attributes {stable_mosaic.version = 11 : i64} {
  func.func @_fused_matmul_k1_kernel(%arg0: i32, %arg1: i32, %arg2: memref<2x576xbf16, #tpu.memory_space<vmem>>, %arg3: memref<576x32xbf16, #tpu.memory_space<vmem>>, %arg4: memref<1x32xf32, #tpu.memory_space<vmem>>, %arg5: memref<2x32xf32, #tpu.memory_space<vmem>>) attributes {dimension_semantics = [#tpu.dimension_semantics<parallel>, #tpu.dimension_semantics<parallel>], iteration_bounds = array<i64: 1, 1>, scalar_prefetch = 0 : i64, scratch_operands = 0 : i64, tpu.core_type = #tpu.core_type<tc>, window_params = [{transform_indices = @transform_0, window_bounds = array<i64: 2, 576>}, {transform_indices = @transform_1, window_bounds = array<i64: 576, 32>}, {transform_indices = @transform_2, window_bounds = array<i64: 1, 32>}, {transform_indices = @transform_3, window_bounds = array<i64: 2, 32>}]} {
    %c0 = arith.constant 0 : index
    %c0_0 = arith.constant 0 : index
    %0 = vector.load %arg2[%c0, %c0_0] : memref<2x576xbf16, #tpu.memory_space<vmem>>, vector<2x576xbf16>
    %c0_1 = arith.constant 0 : index
    %c0_2 = arith.constant 0 : index
    %1 = vector.load %arg3[%c0_1, %c0_2] : memref<576x32xbf16, #tpu.memory_space<vmem>>, vector<576x32xbf16>
    %cst = arith.constant dense<0.000000e+00> : vector<2x32xf32>
    %2 = tpu.matmul %0, %1, %cst {dimension_numbers = #tpu.dot_dimension_numbers<[1], [0], [0], [1], [0, 0, 1, 1], [], []>} : vector<2x576xbf16>, vector<576x32xbf16>, vector<2x32xf32> -> vector<2x32xf32>
    %c0_3 = arith.constant 0 : index
    %c0_4 = arith.constant 0 : index
    %3 = vector.load %arg4[%c0_3, %c0_4] : memref<1x32xf32, #tpu.memory_space<vmem>>, vector<1x32xf32>
    %4 = vector.broadcast %3 : vector<1x32xf32> to vector<2x32xf32>
    %5 = arith.addf %2, %4 : vector<2x32xf32>
    %cst_5 = arith.constant 0.000000e+00 : f32
    %6 = vector.broadcast %cst_5 : f32 to vector<2x32xf32>
    %7 = arith.cmpf oge, %5, %6 : vector<2x32xf32>
    %cst_6 = arith.constant 2.000000e-01 : f32
    %8 = vector.broadcast %cst_6 : f32 to vector<2x32xf32>
    %9 = arith.mulf %8, %5 : vector<2x32xf32>
    %10 = arith.select %7, %5, %9 : vector<2x32xi1>, vector<2x32xf32>
    %c0_7 = arith.constant 0 : index
    %c0_8 = arith.constant 0 : index
    %11 = vector.load %arg5[%c0_7, %c0_8] : memref<2x32xf32, #tpu.memory_space<vmem>>, vector<2x32xf32>
    tpu.vector_store %arg5[%c0_7, %c0_8], %10 {strides = array<i32>} : memref<2x32xf32, #tpu.memory_space<vmem>>, vector<2x32xf32>,
    return
  }
  func.func @transform_0(%arg0: i32, %arg1: i32) -> (i32, i32) {
    %c0_i32 = arith.constant 0 : i32
    %c0_i32_0 = arith.constant 0 : i32
    return %arg0, %c0_i32 : i32, i32
  }
  func.func @transform_1(%arg0: i32, %arg1: i32) -> (i32, i32) {
    %c0_i32 = arith.constant 0 : i32
    %c0_i32_0 = arith.constant 0 : i32
    return %c0_i32, %arg1 : i32, i32
  }
  func.func @transform_2(%arg0: i32, %arg1: i32) -> (i32, i32) {
    %c0_i32 = arith.constant 0 : i32
    %c0_i32_0 = arith.constant 0 : i32
    return %c0_i32, %arg1 : i32, i32
  }
  func.func @transform_3(%arg0: i32, %arg1: i32) -> (i32, i32) {
    %c0_i32 = arith.constant 0 : i32
    return %arg0, %arg1 : i32, i32
  }
}

</mosaic_0001>

<bundles_post_ra>
// kernel: _lambda_.5
= control target key start
LH: loop header
LB: loop body
LE: loop exit
PB: predicated region body
PF: predicated region fallthrough
CT: control target
= control target key end

     0   :  { %s1426_s12 = smov 0   ;;  %s1428_s13 = smov 0   ;;  %s1771_s0 = inlined_call_operand.vmem [shape: bf16[1152,27], index: 0, kind: input, shape index: {}]   ;;  %s1772_s1 = inlined_call_operand.vmem [shape: bf16[27,8], index: 1, kind: input, shape index: {}]   ;;  %s1773_s2 = inlined_call_operand.vmem [shape: f32[1,8], index: 2, kind: input, shape index: {}]   ;;  %s1774_s3 = inlined_call_operand.vmem [shape: bf16[1152,8], index: 3, kind: output, shape index: {}]  }
   0x1   :  { %s1430_s14 = smov 0   ;;  %s1432_s15 = smov 0  }
   0x2   :  { %s1434_s16 = smov 0  }
   0x3 LB: > { %s1053_s17 = sadd.s32 4294967295, %s1371_s16   ;;  %s25_s18 = sadd.s32 1, %s1367_s15  ;;  %s1371_s16 = sphi %s1434_s16, %s13_s16   ;;  %s1367_s15 = sphi %s1432_s15, %s1784_s15   ;;  %s1363_s14 = sphi %s1430_s14, %s1783_s14   ;;  %s1359_s13 = sphi %s1428_s13, %s1782_s13   ;;  %s1355_s12 = sphi %s1426_s12, %s1781_s12  }
   0x4   : > { %p27_p0 = scmp.ge.s32.totalorder %s25_s18, 5  ;;  %s112_s19 = sadd.s32 1, %s1359_s13 }
   0x5   : > { %p122_p1 = scmp.ne.s32.totalorder %s1359_s13, %s1355_s12  ;;  %p123_p2 = scmp.eq.s32.totalorder %s1053_s17, 4 }
   0x6   : > { %s1786_s18 = smov (%p27_p0, %s25_s18), 0  ;;  %p1059_p4 = scmp.ge.s32.totalorder %s1371_s16, 1 }
   0x7   : > { %p1458_p3 = por %p123_p2, %p122_p1  ;;  %s107_s21 = ssub.s32 %s1367_s15, %s1786_s18 }
   0x8   : > { %p177_p5 = scmp.lt.s32.totalorder %s1371_s16, 6  ;;  %p110_p6 = scmp.eq.s32.totalorder %s107_s21, 0 }
   0xa   : > { %p178_p7 = pnand %p1059_p4, %p177_p5 }
   0xb   : > { %s1467_s22 = scalar_select %p110_p6, %s1359_s13, %s112_s19  }
   0xc   : > { %181 = sbr.rel (%p178_p7) target bundleno = 292 (0x124), region = 32  ;;  %s1476_s27 = sshll.u32 (!%p178_p7), %s1363_s14, 5 }
   0xd   : > { %p216_p8 = scmp.lt.s32.totalorder (!%p178_p7), %s1476_s27, 143  ;;  %s208_s10 = sand.u32 (!%p178_p7), 1, %s1355_s12  }
   0xe   : > { %s1060_s11 = sshll.u32 (!%p178_p7), %s208_s10, 7 }
   0xf   : > { %s1528_s17 = scalar_lea.vmem (!%p178_p7), [#allocation2], %s1060_s11  }
  0x11   : > { %v1133_v0 = vld [vmem:[%s1772_s1 + $0x8] sm:$0xf]  ;;  %v1185_v1 = vld [vmem:[%s1772_s1 + $0x8] sm:$0x30]  ;;  %vm418_vm0 = vcmask 1044480   ;;  %vm419_vm1 = vcmask 1045504  }
  0x12   : > { %v1134_v2 = vor.u32 %v1185_v1, %v1133_v0  ;;  %v1405_v3 = vmov 65535   ;;  %s217_s28 = scalar_select %p216_p8, %s1476_s27, 143  ;;  %v1184_v7 = vld [vmem:[%s1772_s1] sm:$0xff]  ;;  %vm369_vm2 = vcmask 220160   ;;  %vm642_vm5 = vcmask 60416  }
  0x13   : > { %v420_v4 = vsel %vm418_vm0, 4294967295, %v1405_v3  ;;  %v1523_v24 = vld [vmem:[%s1773_s2] ss:$0 sm:$0xff]  ;;  %s683_s12 = ssub.s32 (%p1458_p3), 144, %s1476_s27  ;;  %s1186_s19 = sshll.u32 (%p1458_p3), %s1363_s14, 7 }
  0x14   : > { %v421_v5 = vsel %vm419_vm1, %v420_v4, 0  ;;  %s1062_s4 = sshll.u32 %s217_s28, 2  ;;  %p684_p9 = scmp.lt.s32.totalorder (%p1458_p3), %s683_s12, 32 }
  0x15   : > { %v423_v6 = vand.u32 %v1134_v2, %v421_v5  ;;  %s1486_s7 = scalar_lea.vmem %s1771_s0, %s1062_s4  ;;  %s1631_s24 = scalar_lea.vmem (%p1458_p3), %s1774_s3, %s1186_s19  }
  0x16   : > { %v1168_v8 = vld [vmem:[%s1486_s7] sm:$0xff]  ;;  %v1169_v12 = vld [vmem:[%s1486_s7 + $0x8] sm:$0xff]  ;;  %v1170_v16 = vld [vmem:[%s1486_s7 + $0x10] sm:$0xff] }
  0x17   : > { %431 = vmatpush.bf16.msra.mxu0 %v423_v6  ;;  %1189 = vmatpush.bf16.msra.mxu1 %v423_v6  ;;  %v1172_v9 = vld [vmem:[%s1486_s7 + $0x20] sm:$0xff]  ;;  %v1173_v13 = vld [vmem:[%s1486_s7 + $0x28] sm:$0xff]  ;;  %v1174_v17 = vld [vmem:[%s1486_s7 + $0x30] sm:$0xff] }
  0x18   : > { %1190 = vmatpush.bf16.msra.mxu2 %v423_v6  ;;  %1191 = vmatpush.bf16.msra.mxu3 %v423_v6  ;;  %v1176_v10 = vld [vmem:[%s1486_s7 + $0x40] sm:$0xff]  ;;  %v1177_v14 = vld [vmem:[%s1486_s7 + $0x48] sm:$0xff]  ;;  %v1178_v18 = vld [vmem:[%s1486_s7 + $0x50] sm:$0xff] }
  0x19   : > { %v1180_v11 = vld [vmem:[%s1486_s7 + $0x60] sm:$0xff]  ;;  %v1181_v15 = vld [vmem:[%s1486_s7 + $0x68] sm:$0xff]  ;;  %v1182_v19 = vld [vmem:[%s1486_s7 + $0x70] sm:$0xff] }
  0x1a   : > { %v1171_v20 = vld [vmem:[%s1486_s7 + $0x18] sm:$0xff] }
  0x1b   : > { %432 = vmatpush.bf16.msra.mxu0 %v1184_v7  ;;  %1192 = vmatpush.bf16.msra.mxu1 %v1184_v7  ;;  %v1175_v21 = vld [vmem:[%s1486_s7 + $0x38] sm:$0xff] }
  0x1c   : > { %1193 = vmatpush.bf16.msra.mxu2 %v1184_v7  ;;  %1194 = vmatpush.bf16.msra.mxu3 %v1184_v7  ;;  %v1179_v22 = vld [vmem:[%s1486_s7 + $0x58] sm:$0xff] }
  0x1d   : > { %v1183_v23 = vld [vmem:[%s1486_s7 + $0x78] sm:$0xff] }
  0x1e   : > { %1135 = vmatmul.msk.bf16.vlgmr.msra.gmra.mxu0 %vm369_vm2, %v1168_v8  ;;  %1139 = vmatmul.msk.bf16.vlgmr.msra.gmra.mxu1 %vm369_vm2, %v1172_v9 }
  0x1f   : > { %1143 = vmatmul.msk.bf16.vlgmr.msra.gmra.mxu2 %vm369_vm2, %v1176_v10  ;;  %1147 = vmatmul.msk.bf16.vlgmr.msra.gmra.mxu3 %vm369_vm2, %v1180_v11 }
  0x2e   : > { %1136 = vmatmul.msk.bf16.gmra.mxu0 %vm369_vm2, %v1169_v12  ;;  %1140 = vmatmul.msk.bf16.gmra.mxu1 %vm369_vm2, %v1173_v13 }
  0x2f   : > { %1144 = vmatmul.msk.bf16.gmra.mxu2 %vm369_vm2, %v1177_v14  ;;  %1148 = vmatmul.msk.bf16.gmra.mxu3 %vm369_vm2, %v1181_v15 }
  0x3e   : > { %1137 = vmatmul.msk.bf16.gmra.mxu0 %vm369_vm2, %v1170_v16  ;;  %1141 = vmatmul.msk.bf16.gmra.mxu1 %vm369_vm2, %v1174_v17 }
  0x3f   : > { %1145 = vmatmul.msk.bf16.gmra.mxu2 %vm369_vm2, %v1178_v18  ;;  %1149 = vmatmul.msk.bf16.gmra.mxu3 %vm369_vm2, %v1182_v19 }
  0x4e   : > { %1138 = vmatmul.msk.bf16.gmra.mxu0 %vm369_vm2, %v1171_v20  ;;  %1142 = vmatmul.msk.bf16.gmra.mxu1 %vm369_vm2, %v1175_v21 }
  0x4f   : > { %1146 = vmatmul.msk.bf16.gmra.mxu2 %vm369_vm2, %v1179_v22  ;;  %1150 = vmatmul.msk.bf16.gmra.mxu3 %vm369_vm2, %v1183_v23 }
  0x9b   : > { %v434_v25 = vpop.f32.mrf.mxu0  ;;  %v454_v26 = vpop.f32.mrf.mxu1 }
  0x9c   : > { %v435_v27 = vadd.f32 %v1523_v24, %v434_v25  ;;  %v455_v28 = vadd.f32 %v1523_v24, %v454_v26 }
  0x9e   : > { %vm514_vm3 = vcmp.ge.f32.partialorder %v435_v27, 0.0  ;;  %v546_v29 = vmul.f32 0.2, %v435_v27  ;;  %vm522_vm4 = vcmp.ge.f32.partialorder %v455_v28, 0.0  ;;  %v554_v30 = vmul.f32 0.2, %v455_v28 }
  0xa0   : > { %v578_v31 = vsel %vm514_vm3, %v435_v27, %v546_v29  ;;  %v586_v32 = vsel %vm522_vm4, %v455_v28, %v554_v30 }
  0xa1   : > { %v610_v33 = vpack.c.bf16 %v578_v31, %v578_v31  ;;  %v618_v34 = vpack.c.bf16 %v586_v32, %v586_v32 }
  0xa2   : > { %v474_v35 = vpop.f32.mrf.mxu2  ;;  %v494_v36 = vpop.f32.mrf.mxu3 }
  0xa3   : > { %643 = vst.msk [vmem:[%s1528_s17] sm:$0xf] %vm642_vm5, %v610_v33  ;;  %v475_v37 = vadd.f32 %v1523_v24, %v474_v35  ;;  %v495_v38 = vadd.f32 %v1523_v24, %v494_v36  ;;  %v436_v39 = vpop.f32.mrf.mxu0  ;;  %v456_v40 = vpop.f32.mrf.mxu1 }
  0xa4   : > { %651 = vst.msk [vmem:[%s1528_s17 + $0x20] sm:$0xf] %vm642_vm5, %v618_v34  ;;  %v437_v41 = vadd.f32 %v1523_v24, %v436_v39  ;;  %v457_v42 = vadd.f32 %v1523_v24, %v456_v40 }
  0xa5   : > { %vm530_vm6 = vcmp.ge.f32.partialorder %v475_v37, 0.0  ;;  %v562_v43 = vmul.f32 0.2, %v475_v37  ;;  %vm538_vm7 = vcmp.ge.f32.partialorder %v495_v38, 0.0  ;;  %v570_v44 = vmul.f32 0.2, %v495_v38 }
  0xa6   : > { %vm515_vm8 = vcmp.ge.f32.partialorder %v437_v41, 0.0  ;;  %v547_v45 = vmul.f32 0.2, %v437_v41  ;;  %vm523_vm9 = vcmp.ge.f32.partialorder %v457_v42, 0.0  ;;  %v555_v46 = vmul.f32 0.2, %v457_v42 }
  0xa7   : > { %v594_v47 = vsel %vm530_vm6, %v475_v37, %v562_v43  ;;  %v602_v48 = vsel %vm538_vm7, %v495_v38, %v570_v44 }
  0xa8   : > { %v626_v49 = vpack.c.bf16 %v594_v47, %v594_v47  ;;  %v634_v50 = vpack.c.bf16 %v602_v48, %v602_v48  ;;  %v579_v51 = vsel %vm515_vm8, %v437_v41, %v547_v45  ;;  %v587_v52 = vsel %vm523_vm9, %v457_v42, %v555_v46 }
  0xa9   : > { %v611_v53 = vpack.c.bf16 %v579_v51, %v579_v51  ;;  %v619_v54 = vpack.c.bf16 %v587_v52, %v587_v52 }
  0xaa   : > { %659 = vst.msk [vmem:[%s1528_s17 + $0x40] sm:$0xf] %vm642_vm5, %v626_v49  ;;  %v476_v55 = vpop.f32.mrf.mxu2  ;;  %v496_v56 = vpop.f32.mrf.mxu3 }
  0xab   : > { %667 = vst.msk [vmem:[%s1528_s17 + $0x60] sm:$0xf] %vm642_vm5, %v634_v50  ;;  %v477_v57 = vadd.f32 %v1523_v24, %v476_v55  ;;  %v497_v58 = vadd.f32 %v1523_v24, %v496_v56  ;;  %v439_v59 = vpop.f32.mrf.mxu0  ;;  %v459_v60 = vpop.f32.mrf.mxu1 }
  0xac   : > { %644 = vst.msk [vmem:[%s1528_s17 + $0x4] sm:$0xf] %vm642_vm5, %v611_v53  ;;  %v440_v61 = vadd.f32 %v1523_v24, %v439_v59  ;;  %v460_v62 = vadd.f32 %v1523_v24, %v459_v60 }
  0xad   : > { %652 = vst.msk [vmem:[%s1528_s17 + $0x24] sm:$0xf] %vm642_vm5, %v619_v54  ;;  %vm531_vm10 = vcmp.ge.f32.partialorder %v477_v57, 0.0  ;;  %v563_v63 = vmul.f32 0.2, %v477_v57  ;;  %vm539_vm11 = vcmp.ge.f32.partialorder %v497_v58, 0.0 }
  0xae   : > { %v571_v0 = vmul.f32 0.2, %v497_v58  ;;  %vm516_vm12 = vcmp.ge.f32.partialorder %v440_v61, 0.0  ;;  %v548_v1 = vmul.f32 0.2, %v440_v61  ;;  %vm524_vm13 = vcmp.ge.f32.partialorder %v460_v62, 0.0 }
  0xaf   : > { %v595_v2 = vsel %vm531_vm10, %v477_v57, %v563_v63  ;;  %v556_v3 = vmul.f32 0.2, %v460_v62 }
  0xb0   : > { %v627_v4 = vpack.c.bf16 %v595_v2, %v595_v2  ;;  %v603_v5 = vsel %vm539_vm11, %v497_v58, %v571_v0  ;;  %v580_v6 = vsel %vm516_vm12, %v440_v61, %v548_v1 }
  0xb1   : > { %v635_v7 = vpack.c.bf16 %v603_v5, %v603_v5  ;;  %v612_v8 = vpack.c.bf16 %v580_v6, %v580_v6  ;;  %v588_v9 = vsel %vm524_vm13, %v460_v62, %v556_v3 }
  0xb2   : > { %660 = vst.msk [vmem:[%s1528_s17 + $0x44] sm:$0xf] %vm642_vm5, %v627_v4  ;;  %v620_v10 = vpack.c.bf16 %v588_v9, %v588_v9  ;;  %v479_v11 = vpop.f32.mrf.mxu2  ;;  %v499_v12 = vpop.f32.mrf.mxu3 }
  0xb3   : > { %668 = vst.msk [vmem:[%s1528_s17 + $0x64] sm:$0xf] %vm642_vm5, %v635_v7  ;;  %v480_v13 = vadd.f32 %v1523_v24, %v479_v11  ;;  %v500_v14 = vadd.f32 %v1523_v24, %v499_v12  ;;  %v441_v15 = vpop.f32.mrf.mxu0  ;;  %v461_v16 = vpop.f32.mrf.mxu1 }
  0xb4   : > { %645 = vst.msk [vmem:[%s1528_s17 + $0x8] sm:$0xf] %vm642_vm5, %v612_v8  ;;  %v442_v17 = vadd.f32 %v1523_v24, %v441_v15  ;;  %v462_v18 = vadd.f32 %v1523_v24, %v461_v16 }
  0xb5   : > { %653 = vst.msk [vmem:[%s1528_s17 + $0x28] sm:$0xf] %vm642_vm5, %v620_v10  ;;  %vm532_vm14 = vcmp.ge.f32.partialorder %v480_v13, 0.0  ;;  %v564_v19 = vmul.f32 0.2, %v480_v13  ;;  %vm540_vm15 = vcmp.ge.f32.partialorder %v500_v14, 0.0 }
  0xb6   : > { %v572_v20 = vmul.f32 0.2, %v500_v14  ;;  %vm517_vm0 = vcmp.ge.f32.partialorder %v442_v17, 0.0  ;;  %v549_v21 = vmul.f32 0.2, %v442_v17  ;;  %vm525_vm1 = vcmp.ge.f32.partialorder %v462_v18, 0.0 }
  0xb7   : > { %v596_v22 = vsel %vm532_vm14, %v480_v13, %v564_v19  ;;  %v557_v23 = vmul.f32 0.2, %v462_v18 }
  0xb8   : > { %v628_v25 = vpack.c.bf16 %v596_v22, %v596_v22  ;;  %v604_v26 = vsel %vm540_vm15, %v500_v14, %v572_v20  ;;  %v581_v27 = vsel %vm517_vm0, %v442_v17, %v549_v21 }
  0xb9   : > { %v636_v28 = vpack.c.bf16 %v604_v26, %v604_v26  ;;  %v613_v29 = vpack.c.bf16 %v581_v27, %v581_v27  ;;  %v589_v30 = vsel %vm525_vm1, %v462_v18, %v557_v23 }
  0xba   : > { %661 = vst.msk [vmem:[%s1528_s17 + $0x48] sm:$0xf] %vm642_vm5, %v628_v25  ;;  %v621_v31 = vpack.c.bf16 %v589_v30, %v589_v30  ;;  %v481_v32 = vpop.f32.mrf.mxu2  ;;  %v501_v33 = vpop.f32.mrf.mxu3 }
  0xbb   : > { %669 = vst.msk [vmem:[%s1528_s17 + $0x68] sm:$0xf] %vm642_vm5, %v636_v28  ;;  %v482_v34 = vadd.f32 %v1523_v24, %v481_v32  ;;  %v502_v35 = vadd.f32 %v1523_v24, %v501_v33  ;;  %v444_v36 = vpop.f32.mrf.mxu0  ;;  %v464_v37 = vpop.f32.mrf.mxu1 }
  0xbc   : > { %646 = vst.msk [vmem:[%s1528_s17 + $0xc] sm:$0xf] %vm642_vm5, %v613_v29  ;;  %v445_v38 = vadd.f32 %v1523_v24, %v444_v36  ;;  %v465_v39 = vadd.f32 %v1523_v24, %v464_v37 }
  0xbd   : > { %654 = vst.msk [vmem:[%s1528_s17 + $0x2c] sm:$0xf] %vm642_vm5, %v621_v31  ;;  %vm533_vm2 = vcmp.ge.f32.partialorder %v482_v34, 0.0  ;;  %v565_v40 = vmul.f32 0.2, %v482_v34  ;;  %vm541_vm3 = vcmp.ge.f32.partialorder %v502_v35, 0.0 }
  0xbe   : > { %v573_v41 = vmul.f32 0.2, %v502_v35  ;;  %vm518_vm4 = vcmp.ge.f32.partialorder %v445_v38, 0.0  ;;  %v550_v42 = vmul.f32 0.2, %v445_v38  ;;  %vm526_vm6 = vcmp.ge.f32.partialorder %v465_v39, 0.0 }
  0xbf   : > { %v597_v43 = vsel %vm533_vm2, %v482_v34, %v565_v40  ;;  %v558_v44 = vmul.f32 0.2, %v465_v39 }
  0xc0   : > { %v629_v45 = vpack.c.bf16 %v597_v43, %v597_v43  ;;  %v605_v46 = vsel %vm541_vm3, %v502_v35, %v573_v41  ;;  %v582_v47 = vsel %vm518_vm4, %v445_v38, %v550_v42 }
  0xc1   : > { %v637_v48 = vpack.c.bf16 %v605_v46, %v605_v46  ;;  %v614_v49 = vpack.c.bf16 %v582_v47, %v582_v47  ;;  %v590_v50 = vsel %vm526_vm6, %v465_v39, %v558_v44 }
  0xc2   : > { %662 = vst.msk [vmem:[%s1528_s17 + $0x4c] sm:$0xf] %vm642_vm5, %v629_v45  ;;  %v622_v51 = vpack.c.bf16 %v590_v50, %v590_v50  ;;  %v484_v52 = vpop.f32.mrf.mxu2  ;;  %v504_v53 = vpop.f32.mrf.mxu3 }
  0xc3   : > { %670 = vst.msk [vmem:[%s1528_s17 + $0x6c] sm:$0xf] %vm642_vm5, %v637_v48  ;;  %v485_v54 = vadd.f32 %v1523_v24, %v484_v52  ;;  %v505_v55 = vadd.f32 %v1523_v24, %v504_v53  ;;  %v446_v56 = vpop.f32.mrf.mxu0  ;;  %v466_v57 = vpop.f32.mrf.mxu1 }
  0xc4   : > { %647 = vst.msk [vmem:[%s1528_s17 + $0x10] sm:$0xf] %vm642_vm5, %v614_v49  ;;  %v447_v58 = vadd.f32 %v1523_v24, %v446_v56  ;;  %v467_v59 = vadd.f32 %v1523_v24, %v466_v57 }
  0xc5   : > { %655 = vst.msk [vmem:[%s1528_s17 + $0x30] sm:$0xf] %vm642_vm5, %v622_v51  ;;  %vm534_vm7 = vcmp.ge.f32.partialorder %v485_v54, 0.0  ;;  %v566_v60 = vmul.f32 0.2, %v485_v54  ;;  %vm542_vm8 = vcmp.ge.f32.partialorder %v505_v55, 0.0 }
  0xc6   : > { %v574_v61 = vmul.f32 0.2, %v505_v55  ;;  %vm519_vm9 = vcmp.ge.f32.partialorder %v447_v58, 0.0  ;;  %v551_v62 = vmul.f32 0.2, %v447_v58  ;;  %vm527_vm10 = vcmp.ge.f32.partialorder %v467_v59, 0.0 }
  0xc7   : > { %v598_v63 = vsel %vm534_vm7, %v485_v54, %v566_v60  ;;  %v559_v0 = vmul.f32 0.2, %v467_v59 }
  0xc8   : > { %v630_v1 = vpack.c.bf16 %v598_v63, %v598_v63  ;;  %v606_v2 = vsel %vm542_vm8, %v505_v55, %v574_v61  ;;  %v583_v3 = vsel %vm519_vm9, %v447_v58, %v551_v62 }
  0xc9   : > { %v638_v4 = vpack.c.bf16 %v606_v2, %v606_v2  ;;  %v615_v5 = vpack.c.bf16 %v583_v3, %v583_v3  ;;  %v591_v6 = vsel %vm527_vm10, %v467_v59, %v559_v0 }
  0xca   : > { %663 = vst.msk [vmem:[%s1528_s17 + $0x50] sm:$0xf] %vm642_vm5, %v630_v1  ;;  %v623_v7 = vpack.c.bf16 %v591_v6, %v591_v6  ;;  %v486_v8 = vpop.f32.mrf.mxu2  ;;  %v506_v9 = vpop.f32.mrf.mxu3 }
  0xcb   : > { %671 = vst.msk [vmem:[%s1528_s17 + $0x70] sm:$0xf] %vm642_vm5, %v638_v4  ;;  %v487_v10 = vadd.f32 %v1523_v24, %v486_v8  ;;  %v507_v11 = vadd.f32 %v1523_v24, %v506_v9  ;;  %v449_v12 = vpop.f32.mrf.mxu0  ;;  %v469_v13 = vpop.f32.mrf.mxu1 }
  0xcc   : > { %648 = vst.msk [vmem:[%s1528_s17 + $0x14] sm:$0xf] %vm642_vm5, %v615_v5  ;;  %v450_v14 = vadd.f32 %v1523_v24, %v449_v12  ;;  %v470_v15 = vadd.f32 %v1523_v24, %v469_v13 }
  0xcd   : > { %656 = vst.msk [vmem:[%s1528_s17 + $0x34] sm:$0xf] %vm642_vm5, %v623_v7  ;;  %vm535_vm11 = vcmp.ge.f32.partialorder %v487_v10, 0.0  ;;  %v567_v16 = vmul.f32 0.2, %v487_v10  ;;  %vm543_vm12 = vcmp.ge.f32.partialorder %v507_v11, 0.0 }
  0xce   : > { %v575_v17 = vmul.f32 0.2, %v507_v11  ;;  %vm520_vm13 = vcmp.ge.f32.partialorder %v450_v14, 0.0  ;;  %v552_v18 = vmul.f32 0.2, %v450_v14  ;;  %vm528_vm14 = vcmp.ge.f32.partialorder %v470_v15, 0.0 }
  0xcf   : > { %v599_v19 = vsel %vm535_vm11, %v487_v10, %v567_v16  ;;  %v560_v20 = vmul.f32 0.2, %v470_v15 }
  0xd0   : > { %v631_v21 = vpack.c.bf16 %v599_v19, %v599_v19  ;;  %v607_v22 = vsel %vm543_vm12, %v507_v11, %v575_v17  ;;  %v584_v23 = vsel %vm520_vm13, %v450_v14, %v552_v18 }
  0xd1   : > { %v639_v25 = vpack.c.bf16 %v607_v22, %v607_v22  ;;  %v616_v26 = vpack.c.bf16 %v584_v23, %v584_v23  ;;  %v592_v27 = vsel %vm528_vm14, %v470_v15, %v560_v20 }
  0xd2   : > { %664 = vst.msk [vmem:[%s1528_s17 + $0x54] sm:$0xf] %vm642_vm5, %v631_v21  ;;  %v624_v28 = vpack.c.bf16 %v592_v27, %v592_v27  ;;  %v489_v29 = vpop.f32.mrf.mxu2  ;;  %v509_v30 = vpop.f32.mrf.mxu3 }
  0xd3   : > { %672 = vst.msk [vmem:[%s1528_s17 + $0x74] sm:$0xf] %vm642_vm5, %v639_v25  ;;  %v490_v31 = vadd.f32 %v1523_v24, %v489_v29  ;;  %v510_v32 = vadd.f32 %v1523_v24, %v509_v30  ;;  %v451_v33 = vpop.f32.mrf.mxu0  ;;  %v471_v34 = vpop.f32.mrf.mxu1 }
  0xd4   : > { %649 = vst.msk [vmem:[%s1528_s17 + $0x18] sm:$0xf] %vm642_vm5, %v616_v26  ;;  %v452_v35 = vadd.f32 %v1523_v24, %v451_v33  ;;  %v472_v36 = vadd.f32 %v1523_v24, %v471_v34 }
  0xd5   : > { %657 = vst.msk [vmem:[%s1528_s17 + $0x38] sm:$0xf] %vm642_vm5, %v624_v28  ;;  %vm536_vm15 = vcmp.ge.f32.partialorder %v490_v31, 0.0  ;;  %v568_v37 = vmul.f32 0.2, %v490_v31  ;;  %vm544_vm0 = vcmp.ge.f32.partialorder %v510_v32, 0.0 }
  0xd6   : > { %v576_v38 = vmul.f32 0.2, %v510_v32  ;;  %vm521_vm1 = vcmp.ge.f32.partialorder %v452_v35, 0.0  ;;  %v553_v39 = vmul.f32 0.2, %v452_v35  ;;  %vm529_vm2 = vcmp.ge.f32.partialorder %v472_v36, 0.0 }
  0xd7   : > { %v600_v40 = vsel %vm536_vm15, %v490_v31, %v568_v37  ;;  %v561_v41 = vmul.f32 0.2, %v472_v36 }
  0xd8   : > { %v632_v42 = vpack.c.bf16 %v600_v40, %v600_v40  ;;  %v608_v43 = vsel %vm544_vm0, %v510_v32, %v576_v38  ;;  %v585_v44 = vsel %vm521_vm1, %v452_v35, %v553_v39 }
  0xd9   : > { %v640_v45 = vpack.c.bf16 %v608_v43, %v608_v43  ;;  %v617_v46 = vpack.c.bf16 %v585_v44, %v585_v44  ;;  %v593_v47 = vsel %vm529_vm2, %v472_v36, %v561_v41 }
  0xda   : > { %665 = vst.msk [vmem:[%s1528_s17 + $0x58] sm:$0xf] %vm642_vm5, %v632_v42  ;;  %v625_v48 = vpack.c.bf16 %v593_v47, %v593_v47  ;;  %v491_v49 = vpop.f32.mrf.mxu2  ;;  %v511_v50 = vpop.f32.mrf.mxu3 }
  0xdb   : > { %673 = vst.msk [vmem:[%s1528_s17 + $0x78] sm:$0xf] %vm642_vm5, %v640_v45  ;;  %v492_v51 = vadd.f32 %v1523_v24, %v491_v49  ;;  %v512_v52 = vadd.f32 %v1523_v24, %v511_v50 }
  0xdc   : > { %650 = vst.msk [vmem:[%s1528_s17 + $0x1c] sm:$0xf] %vm642_vm5, %v617_v46 }
  0xdd   : > { %658 = vst.msk [vmem:[%s1528_s17 + $0x3c] sm:$0xf] %vm642_vm5, %v625_v48  ;;  %vm537_vm3 = vcmp.ge.f32.partialorder %v492_v51, 0.0  ;;  %v569_v53 = vmul.f32 0.2, %v492_v51  ;;  %vm545_vm4 = vcmp.ge.f32.partialorder %v512_v52, 0.0 }
  0xde   : > { %v577_v54 = vmul.f32 0.2, %v512_v52 }
  0xdf   : > { %v601_v55 = vsel %vm537_vm3, %v492_v51, %v569_v53  ;;  %681 = sbr.rel (!%p1458_p3) target bundleno = 292 (0x124), region = 36 }
  0xe0   : > { %v633_v56 = vpack.c.bf16 %v601_v55, %v601_v55  ;;  %v609_v57 = vsel %vm545_vm4, %v512_v52, %v577_v54 }
  0xe1   : > { %v641_v58 = vpack.c.bf16 %v609_v57, %v609_v57 }
  0xe2   : > { %666 = vst.msk [vmem:[%s1528_s17 + $0x5c] sm:$0xf] %vm642_vm5, %v633_v56 }
  0xe3   : > { %674 = vst.msk [vmem:[%s1528_s17 + $0x7c] sm:$0xf] %vm642_vm5, %v641_v58 }
  0xe4   : > { %s1788_s12 = smov (!%p684_p9, %s683_s12), 32 }
  0xe5   : > { %s1153_s25 = sshll.u32 %s1788_s12, 2 }
  0xe6   : > { %p1156_p10 = scmp.eq.s32.totalorder %s1153_s25, 0 }
  0xe7   : > { %s1637_s26 = sshrl.u32 (!%p1156_p10), %s1788_s12, 5 }
  0xe8   : > { %693 = sbr.rel (%p1156_p10) target bundleno = 292 (0x124), region = 40  ;;  %p1157_p11 = scmp.le.s32.totalorder (!%p1156_p10), %s1637_s26, 0 }
  0xed   : > { %983 = sbr.rel (%p1157_p11) target bundleno = 275 (0x113), region = 118  ;;  %s1776_s14 = smov (!%p1157_p11), %s1631_s24 }
  0xee   : > { %s1777_s20 = smov (!%p1157_p11), %s1528_s17  ;;  %s1646_s27 = smov (!%p1157_p11), 0  }
  0xef   : > { %s1648_s28 = smov (!%p1157_p11), 0  }
  0xf2 LB: >> { %v710_v24 = vld [vmem:[%s1379_s20] sm:$0xf]  ;;  %v712_v59 = vld [vmem:[%s1379_s20 + $0x4] sm:$0xf]  ;;  %v714_v60 = vld [vmem:[%s1379_s20 + $0x8] sm:$0xf]  ;;  %s1387_s28 = sphi %s1648_s28, %s704_s28   ;;  %s1383_s27 = sphi %s1646_s27, %s1780_s27   ;;  %s1379_s20 = sphi %s1777_s20, %s1779_s20   ;;  %s1375_s14 = sphi %s1776_s14, %s1778_s14  }
  0xf3   : >> { %711 = vst [vmem:[%s1375_s14] sm:$0xf] %v710_v24  ;;  %v716_v61 = vld [vmem:[%s1379_s20 + $0xc] sm:$0xf]  ;;  %v718_v62 = vld [vmem:[%s1379_s20 + $0x10] sm:$0xf]  ;;  %s774_s29 = sadd.s32 1, %s1383_s27 }
  0xf4   : >> { %713 = vst [vmem:[%s1375_s14 + $0x4] sm:$0xf] %v712_v59  ;;  %v720_v63 = vld [vmem:[%s1379_s20 + $0x14] sm:$0xf]  ;;  %v722_v0 = vld [vmem:[%s1379_s20 + $0x18] sm:$0xf]  ;;  %p775_p12 = scmp.ge.s32.totalorder %s774_s29, %s1637_s26 }
  0xf5   : >> { %715 = vst [vmem:[%s1375_s14 + $0x8] sm:$0xf] %v714_v60  ;;  %v724_v1 = vld [vmem:[%s1379_s20 + $0x1c] sm:$0xf]  ;;  %v726_v2 = vld [vmem:[%s1379_s20 + $0x20] sm:$0xf] }
  0xf6   : >> { %717 = vst [vmem:[%s1375_s14 + $0xc] sm:$0xf] %v716_v61  ;;  %v728_v3 = vld [vmem:[%s1379_s20 + $0x24] sm:$0xf]  ;;  %v730_v4 = vld [vmem:[%s1379_s20 + $0x28] sm:$0xf] }
  0xf7   : >> { %719 = vst [vmem:[%s1375_s14 + $0x10] sm:$0xf] %v718_v62  ;;  %v732_v5 = vld [vmem:[%s1379_s20 + $0x2c] sm:$0xf]  ;;  %v734_v6 = vld [vmem:[%s1379_s20 + $0x30] sm:$0xf] }
  0xf8   : >> { %721 = vst [vmem:[%s1375_s14 + $0x14] sm:$0xf] %v720_v63  ;;  %v736_v7 = vld [vmem:[%s1379_s20 + $0x34] sm:$0xf]  ;;  %v738_v8 = vld [vmem:[%s1379_s20 + $0x38] sm:$0xf] }
  0xf9   : >> { %723 = vst [vmem:[%s1375_s14 + $0x18] sm:$0xf] %v722_v0  ;;  %v740_v9 = vld [vmem:[%s1379_s20 + $0x3c] sm:$0xf]  ;;  %v742_v10 = vld [vmem:[%s1379_s20 + $0x40] sm:$0xf] }
  0xfa   : >> { %725 = vst [vmem:[%s1375_s14 + $0x1c] sm:$0xf] %v724_v1  ;;  %v744_v11 = vld [vmem:[%s1379_s20 + $0x44] sm:$0xf]  ;;  %s1790_s29 = smov (%p775_p12, %s774_s29), 0  ;;  %s704_s28 = sadd.s32 1, %s1387_s28  }
  0xfb   : >> { %727 = vst [vmem:[%s1375_s14 + $0x20] sm:$0xf] %v726_v2  ;;  %v746_v12 = vld [vmem:[%s1379_s20 + $0x48] sm:$0xf]  ;;  %v748_v13 = vld [vmem:[%s1379_s20 + $0x4c] sm:$0xf]  ;;  %p703_p13 = scmp.ge.s32.totalorder %s704_s28, %s1637_s26  ;;  %s1780_s27 = smov %s1790_s29 }
  0xfc   : >> { %729 = vst [vmem:[%s1375_s14 + $0x24] sm:$0xf] %v728_v3  ;;  %s1158_s30 = sshll.u32 %s1790_s29, 7  ;;  %v750_v14 = vld [vmem:[%s1379_s20 + $0x50] sm:$0xf] }
  0xfd   : >> { %731 = vst [vmem:[%s1375_s14 + $0x28] sm:$0xf] %v730_v4  ;;  %s1707_s4 = scalar_lea.vmem %s1528_s17, %s1158_s30 [#allocation2]   ;;  %s780_s5 = scalar_lea.vmem %s1631_s24, %s1158_s30   ;;  %v752_v15 = vld [vmem:[%s1379_s20 + $0x54] sm:$0xf]  ;;  %v754_v16 = vld [vmem:[%s1379_s20 + $0x58] sm:$0xf] }
  0xfe   : >> { %733 = vst [vmem:[%s1375_s14 + $0x2c] sm:$0xf] %v732_v5  ;;  %v756_v17 = vld [vmem:[%s1379_s20 + $0x5c] sm:$0xf]  ;;  %v758_v18 = vld [vmem:[%s1379_s20 + $0x60] sm:$0xf] }
  0xff   : >> { %735 = vst [vmem:[%s1375_s14 + $0x30] sm:$0xf] %v734_v6  ;;  %v760_v19 = vld [vmem:[%s1379_s20 + $0x64] sm:$0xf]  ;;  %v762_v20 = vld [vmem:[%s1379_s20 + $0x68] sm:$0xf] }
 0x100   : >> { %737 = vst [vmem:[%s1375_s14 + $0x34] sm:$0xf] %v736_v7  ;;  %v764_v21 = vld [vmem:[%s1379_s20 + $0x6c] sm:$0xf]  ;;  %v766_v22 = vld [vmem:[%s1379_s20 + $0x70] sm:$0xf] }
 0x101   : >> { %739 = vst [vmem:[%s1375_s14 + $0x38] sm:$0xf] %v738_v8  ;;  %v768_v23 = vld [vmem:[%s1379_s20 + $0x74] sm:$0xf]  ;;  %v770_v25 = vld [vmem:[%s1379_s20 + $0x78] sm:$0xf] }
 0x102   : >> { %741 = vst [vmem:[%s1375_s14 + $0x3c] sm:$0xf] %v740_v9  ;;  %v772_v26 = vld [vmem:[%s1379_s20 + $0x7c] sm:$0xf]  ;;  %s1779_s20 = smov %s1707_s4 }
 0x103   : >> { %743 = vst [vmem:[%s1375_s14 + $0x40] sm:$0xf] %v742_v10 }
 0x104   : >> { %745 = vst [vmem:[%s1375_s14 + $0x44] sm:$0xf] %v744_v11 }
 0x105   : >> { %747 = vst [vmem:[%s1375_s14 + $0x48] sm:$0xf] %v746_v12 }
 0x106   : >> { %749 = vst [vmem:[%s1375_s14 + $0x4c] sm:$0xf] %v748_v13 }
 0x107   : >> { %751 = vst [vmem:[%s1375_s14 + $0x50] sm:$0xf] %v750_v14 }
 0x108   : >> { %753 = vst [vmem:[%s1375_s14 + $0x54] sm:$0xf] %v752_v15 }
 0x109   : >> { %755 = vst [vmem:[%s1375_s14 + $0x58] sm:$0xf] %v754_v16 }
 0x10a   : >> { %757 = vst [vmem:[%s1375_s14 + $0x5c] sm:$0xf] %v756_v17 }
 0x10b   : >> { %759 = vst [vmem:[%s1375_s14 + $0x60] sm:$0xf] %v758_v18 }
 0x10c   : >> { %761 = vst [vmem:[%s1375_s14 + $0x64] sm:$0xf] %v760_v19 }
 0x10d   : >> { %763 = vst [vmem:[%s1375_s14 + $0x68] sm:$0xf] %v762_v20 }
 0x10e   : >> { %765 = vst [vmem:[%s1375_s14 + $0x6c] sm:$0xf] %v764_v21  ;;  %706 = sbr.rel (!%p703_p13) target bundleno = 242 (0xf2), region = 124 }
 0x10f   : >> { %767 = vst [vmem:[%s1375_s14 + $0x70] sm:$0xf] %v766_v22 }
 0x110   : >> { %769 = vst [vmem:[%s1375_s14 + $0x74] sm:$0xf] %v768_v23 }
 0x111   : >> { %771 = vst [vmem:[%s1375_s14 + $0x78] sm:$0xf] %v770_v25 }
 0x112   : >> { %773 = vst [vmem:[%s1375_s14 + $0x7c] sm:$0xf] %v772_v26  ;;  %s1778_s14 = smov %s780_s5 }
 0x113 PF: > { %s1748_s6 = sand.u32 31, %s1788_s12   ;;  %s1187_s7 = sshll.u32 %s1637_s26, 7 }
 0x114   : > { %s785_s8 = scalar_lea.vmem %s1528_s17, %s1187_s7 [#allocation2]   ;;  %s787_s9 = scalar_lea.vmem %s1631_s24, %s1187_s7  }
 0x115   : > { %p1163_p0 = scmp.le.s32.totalorder %s1748_s6, 0 }
 0x116   : > { %s1389_s10 = smov (!%p1163_p0), %s787_s9   ;;  %s1393_s11 = smov (!%p1163_p0), %s785_s8  }
 0x117   : > { %997 = sbr.rel (%p1163_p0) target bundleno = 292 (0x124), region = 129  ;;  %s1397_s19 = smov (!%p1163_p0), 0  }
 0x118   : > { %s1401_s21 = smov (!%p1163_p0), 0  }
 0x11c LB: >> { %v797_v27 = vld [vmem:[%s1395_s11] sm:$0xf]  ;;  %s799_s12 = sadd.s32 1, %s1399_s19  ;;  %s791_s21 = sadd.s32 1, %s1403_s21   ;;  %s1403_s21 = sphi %s1401_s21, %s791_s21   ;;  %s1399_s19 = sphi %s1397_s19, %s1398_s19   ;;  %s1395_s11 = sphi %s1393_s11, %s804_s11   ;;  %s1391_s10 = sphi %s1389_s10, %s805_s10  }
 0x11d   : >> { %798 = vst [vmem:[%s1391_s10] sm:$0xf] %v797_v27  ;;  %p800_p1 = scmp.ge.s32.totalorder %s799_s12, %s1748_s6  ;;  %p790_p2 = scmp.ge.s32.totalorder %s791_s21, %s1748_s6 }
 0x11f   : >> { %s1792_s12 = smov (%p800_p1, %s799_s12), 0  ;;  %793 = sbr.rel (!%p790_p2) target bundleno = 284 (0x11c), region = 135 }
 0x120   : >> { %s1164_s17 = sshll.u32 %s1792_s12, 2  ;;  %s1398_s19 = smov %s1792_s12  }
 0x121   : >> { %s804_s11 = scalar_lea.vmem %s785_s8, %s1164_s17 [#allocation2]   ;;  %s805_s10 = scalar_lea.vmem %s787_s9, %s1164_s17  }
 0x124 PF: > { %s13_s16 = sadd.s32 1, %s1371_s16   ;;  %s1781_s12 = smov %s1359_s13 }
 0x125   : > { %p10_p3 = scmp.ge.s32.totalorder %s13_s16, 7   ;;  %s1782_s13 = smov %s1467_s22 }
 0x126   : > { %s1783_s14 = smov %s1367_s15  ;;  %s1784_s15 = smov %s1786_s18 }
 0x127   :  { %12 = sbr.rel (!%p10_p3) target bundleno = 3 (0x3), region = 146 }

// kernel: _lambda_.6
= control target key start
LH: loop header
LB: loop body
LE: loop exit
PB: predicated region body
PF: predicated region fallthrough
CT: control target
= control target key end

     0   :  { %s777_s12 = smov 0   ;;  %s779_s13 = smov 0   ;;  %s902_s0 = inlined_call_operand.vmem [shape: bf16[288,72], index: 0, kind: input, shape index: {}]   ;;  %s903_s1 = inlined_call_operand.vmem [shape: bf16[72,8], index: 1, kind: input, shape index: {}]   ;;  %s904_s2 = inlined_call_operand.vmem [shape: f32[1,8], index: 2, kind: input, shape index: {}]   ;;  %s905_s3 = inlined_call_operand.vmem [shape: bf16[288,8], index: 3, kind: output, shape index: {}]  }
   0x1   :  { %s781_s14 = smov 0  }
   0x2 LB: > { %s25_s15 = sadd.s32 1, %s751_s13  ;;  %p614_p0 = scmp.ge.s32.totalorder %s755_s14, 1  ;;  %s755_s14 = sphi %s781_s14, %s13_s14   ;;  %s751_s13 = sphi %s779_s13, %s907_s13   ;;  %s747_s12 = sphi %s777_s12, %s906_s12  }
   0x3   : > { %p27_p1 = scmp.ge.s32.totalorder %s25_s15, 2  ;;  %p169_p2 = scmp.lt.s32.totalorder %s755_s14, 3 }
   0x5   : > { %s909_s15 = smov (%p27_p1, %s25_s15), 0  ;;  %p170_p3 = pnand %p614_p0, %p169_p2 }
   0x6   : > { %s203_s18 = smul.u32 (!%p170_p3), 18, %s747_s12 }
   0x7   : > { %173 = sbr.rel (%p170_p3) target bundleno = 217 (0xd9), region = 32 }
   0x8   : > { %p204_p4 = scmp.lt.s32.totalorder (!%p170_p3), %s203_s18, 35 }
   0xc   : > { %v252_v0 = vld [vmem:[%s903_s1 + $0x20] sm:$0xf]  ;;  %vm357_vm0 = vcmask 1043456   ;;  %v692_v4 = vld [vmem:[%s903_s1 + $0x18] sm:$0xff]  ;;  %v691_v5 = vld [vmem:[%s903_s1 + $0x10] sm:$0xff]  ;;  %s911_s18 = smov (!%p204_p4, %s203_s18), 35 }
   0xd   : > { %v319_v1 = vunpack.c.l.b16 %v252_v0  ;;  %v690_v6 = vld [vmem:[%s903_s1 + $0x8] sm:$0xff]  ;;  %s615_s25 = sshll.u32 %s911_s18, 2  ;;  %v689_v7 = vld [vmem:[%s903_s1] sm:$0xff]  ;;  %vm329_vm1 = vcmask 588800   ;;  %vm487_vm4 = vcmask 60416  }
   0xe   : > { %s207_s30 = scalar_lea.vmem %s902_s0, %s615_s25  ;;  %v830_v17 = vld [vmem:[%s904_s2] ss:$0 sm:$0xff]  ;;  %s841_s8 = scalar_lea.vmem %s905_s3, %s615_s25 }
   0xf   : > { %v324_v2 = vpack.c.b16 %v319_v1, %v319_v1  ;;  %v684_v8 = vld [vmem:[%s207_s30 + $0x20] sm:$0xff]  ;;  %v687_v9 = vld [vmem:[%s207_s30 + $0x38] sm:$0xff]  ;;  %v682_v11 = vld [vmem:[%s207_s30 + $0x10] sm:$0xff] }
  0x10   : > { %v680_v10 = vld [vmem:[%s207_s30] sm:$0xff]  ;;  %v685_v12 = vld [vmem:[%s207_s30 + $0x28] sm:$0xff]  ;;  %v683_v15 = vld [vmem:[%s207_s30 + $0x18] sm:$0xff] }
  0x11   : > { %v359_v3 = vsel %vm357_vm0, %v324_v2, 0  ;;  %v688_v13 = vld [vmem:[%s207_s30 + $0x40] sm:$0xff]  ;;  %v681_v14 = vld [vmem:[%s207_s30 + $0x8] sm:$0xff]  ;;  %v686_v16 = vld [vmem:[%s207_s30 + $0x30] sm:$0xff] }
  0x12   : > { %694 = vmatpush.bf16.msra.mxu2 %v359_v3  ;;  %695 = vmatpush.bf16.msra.mxu3 %v359_v3 }
  0x13   : > { %364 = vmatpush.bf16.msra.mxu0 %v359_v3  ;;  %693 = vmatpush.bf16.msra.mxu1 %v359_v3 }
  0x16   : > { %697 = vmatpush.bf16.msra.mxu2 %v692_v4  ;;  %698 = vmatpush.bf16.msra.mxu3 %v692_v4 }
  0x17   : > { %365 = vmatpush.bf16.msra.mxu0 %v692_v4  ;;  %696 = vmatpush.bf16.msra.mxu1 %v692_v4 }
  0x1a   : > { %700 = vmatpush.bf16.msra.mxu2 %v691_v5  ;;  %701 = vmatpush.bf16.msra.mxu3 %v691_v5 }
  0x1b   : > { %366 = vmatpush.bf16.msra.mxu0 %v691_v5  ;;  %699 = vmatpush.bf16.msra.mxu1 %v691_v5 }
  0x1e   : > { %703 = vmatpush.bf16.msra.mxu2 %v690_v6  ;;  %704 = vmatpush.bf16.msra.mxu3 %v690_v6 }
  0x1f   : > { %367 = vmatpush.bf16.msra.mxu0 %v690_v6  ;;  %702 = vmatpush.bf16.msra.mxu1 %v690_v6 }
  0x22   : > { %706 = vmatpush.bf16.msra.mxu2 %v689_v7  ;;  %707 = vmatpush.bf16.msra.mxu3 %v689_v7 }
  0x23   : > { %368 = vmatpush.bf16.msra.mxu0 %v689_v7  ;;  %705 = vmatpush.bf16.msra.mxu1 %v689_v7 }
  0x25   : > { %673 = vmatmul.msk.bf16.vlgmr.msra.gmra.mxu2 %vm329_vm1, %v684_v8  ;;  %676 = vmatmul.msk.bf16.vlgmr.msra.gmra.mxu3 %vm329_vm1, %v687_v9 }
  0x26   : > { %669 = vmatmul.msk.bf16.vlgmr.msra.gmra.mxu0 %vm329_vm1, %v680_v10  ;;  %671 = vmatmul.msk.bf16.vlgmr.msra.gmra.mxu1 %vm329_vm1, %v682_v11 }
  0x35   : > { %674 = vmatmul.msk.bf16.gmra.mxu2 %vm329_vm1, %v685_v12  ;;  %677 = vmatmul.msk.bf16.gmra.mxu3 %vm329_vm1, %v688_v13 }
  0x36   : > { %670 = vmatmul.msk.bf16.gmra.mxu0 %vm329_vm1, %v681_v14  ;;  %672 = vmatmul.msk.bf16.gmra.mxu1 %vm329_vm1, %v683_v15 }
  0x45   : > { %675 = vmatmul.msk.bf16.gmra.mxu2 %vm329_vm1, %v686_v16 }
  0xa3   : > { %v370_v18 = vpop.f32.mrf.mxu0  ;;  %v380_v19 = vpop.f32.mrf.mxu1 }
  0xa4   : > { %v371_v20 = vadd.f32 %v830_v17, %v370_v18  ;;  %v381_v21 = vadd.f32 %v830_v17, %v380_v19 }
  0xa6   : > { %vm415_vm2 = vcmp.ge.f32.partialorder %v371_v20, 0.0  ;;  %v433_v22 = vmul.f32 0.2, %v371_v20  ;;  %vm419_vm3 = vcmp.ge.f32.partialorder %v381_v21, 0.0  ;;  %v437_v23 = vmul.f32 0.2, %v381_v21 }
  0xa8   : > { %v390_v24 = vpop.f32.mrf.mxu2  ;;  %v451_v25 = vsel %vm415_vm2, %v371_v20, %v433_v22  ;;  %v455_v26 = vsel %vm419_vm3, %v381_v21, %v437_v23  ;;  %v405_v27 = vpop.f32.mrf.mxu3 }
  0xa9   : > { %v391_v28 = vadd.f32 %v830_v17, %v390_v24  ;;  %v469_v29 = vpack.c.bf16 %v451_v25, %v451_v25  ;;  %v473_v30 = vpack.c.bf16 %v455_v26, %v455_v26  ;;  %v406_v31 = vadd.f32 %v830_v17, %v405_v27 }
  0xab   : > { %vm423_vm5 = vcmp.ge.f32.partialorder %v391_v28, 0.0  ;;  %v441_v32 = vmul.f32 0.2, %v391_v28  ;;  %488 = vst.msk [vmem:[%s841_s8] sm:$0xf] %vm487_vm4, %v469_v29  ;;  %vm429_vm6 = vcmp.ge.f32.partialorder %v406_v31, 0.0  ;;  %v372_v33 = vpop.f32.mrf.mxu0  ;;  %v382_v34 = vpop.f32.mrf.mxu1 }
  0xac   : > { %492 = vst.msk [vmem:[%s841_s8 + $0x10] sm:$0xf] %vm487_vm4, %v473_v30  ;;  %v447_v35 = vmul.f32 0.2, %v406_v31  ;;  %v373_v36 = vadd.f32 %v830_v17, %v372_v33  ;;  %v383_v37 = vadd.f32 %v830_v17, %v382_v34 }
  0xad   : > { %v459_v38 = vsel %vm423_vm5, %v391_v28, %v441_v32 }
  0xae   : > { %v477_v39 = vpack.c.bf16 %v459_v38, %v459_v38  ;;  %v465_v40 = vsel %vm429_vm6, %v406_v31, %v447_v35  ;;  %vm416_vm7 = vcmp.ge.f32.partialorder %v373_v36, 0.0  ;;  %v434_v41 = vmul.f32 0.2, %v373_v36 }
  0xaf   : > { %v483_v42 = vpack.c.bf16 %v465_v40, %v465_v40  ;;  %vm420_vm8 = vcmp.ge.f32.partialorder %v383_v37, 0.0  ;;  %v438_v43 = vmul.f32 0.2, %v383_v37 }
  0xb0   : > { %496 = vst.msk [vmem:[%s841_s8 + $0x20] sm:$0xf] %vm487_vm4, %v477_v39  ;;  %v392_v44 = vpop.f32.mrf.mxu2  ;;  %v452_v45 = vsel %vm416_vm7, %v373_v36, %v434_v41  ;;  %v407_v46 = vpop.f32.mrf.mxu3 }
  0xb1   : > { %502 = vst.msk [vmem:[%s841_s8 + $0x38] sm:$0xf] %vm487_vm4, %v483_v42  ;;  %v393_v47 = vadd.f32 %v830_v17, %v392_v44  ;;  %v470_v48 = vpack.c.bf16 %v452_v45, %v452_v45  ;;  %v456_v49 = vsel %vm420_vm8, %v383_v37, %v438_v43  ;;  %v408_v50 = vadd.f32 %v830_v17, %v407_v46 }
  0xb2   : > { %v474_v51 = vpack.c.bf16 %v456_v49, %v456_v49 }
  0xb3   : > { %vm424_vm9 = vcmp.ge.f32.partialorder %v393_v47, 0.0  ;;  %v442_v52 = vmul.f32 0.2, %v393_v47  ;;  %489 = vst.msk [vmem:[%s841_s8 + $0x4] sm:$0xf] %vm487_vm4, %v470_v48  ;;  %vm430_vm10 = vcmp.ge.f32.partialorder %v408_v50, 0.0  ;;  %v375_v53 = vpop.f32.mrf.mxu0  ;;  %v385_v54 = vpop.f32.mrf.mxu1 }
  0xb4   : > { %493 = vst.msk [vmem:[%s841_s8 + $0x14] sm:$0xf] %vm487_vm4, %v474_v51  ;;  %v448_v55 = vmul.f32 0.2, %v408_v50  ;;  %v376_v56 = vadd.f32 %v830_v17, %v375_v53  ;;  %v386_v57 = vadd.f32 %v830_v17, %v385_v54 }
  0xb5   : > { %v460_v58 = vsel %vm424_vm9, %v393_v47, %v442_v52 }
  0xb6   : > { %v478_v59 = vpack.c.bf16 %v460_v58, %v460_v58  ;;  %v466_v60 = vsel %vm430_vm10, %v408_v50, %v448_v55  ;;  %vm417_vm11 = vcmp.ge.f32.partialorder %v376_v56, 0.0  ;;  %v435_v61 = vmul.f32 0.2, %v376_v56 }
  0xb7   : > { %v484_v62 = vpack.c.bf16 %v466_v60, %v466_v60  ;;  %vm421_vm12 = vcmp.ge.f32.partialorder %v386_v57, 0.0  ;;  %v439_v63 = vmul.f32 0.2, %v386_v57 }
  0xb8   : > { %497 = vst.msk [vmem:[%s841_s8 + $0x24] sm:$0xf] %vm487_vm4, %v478_v59  ;;  %v395_v0 = vpop.f32.mrf.mxu2  ;;  %v453_v1 = vsel %vm417_vm11, %v376_v56, %v435_v61  ;;  %v410_v2 = vpop.f32.mrf.mxu3 }
  0xb9   : > { %503 = vst.msk [vmem:[%s841_s8 + $0x3c] sm:$0xf] %vm487_vm4, %v484_v62  ;;  %v396_v3 = vadd.f32 %v830_v17, %v395_v0  ;;  %v471_v4 = vpack.c.bf16 %v453_v1, %v453_v1  ;;  %v457_v5 = vsel %vm421_vm12, %v386_v57, %v439_v63  ;;  %v411_v6 = vadd.f32 %v830_v17, %v410_v2 }
  0xba   : > { %v475_v7 = vpack.c.bf16 %v457_v5, %v457_v5 }
  0xbb   : > { %vm425_vm13 = vcmp.ge.f32.partialorder %v396_v3, 0.0  ;;  %v443_v8 = vmul.f32 0.2, %v396_v3  ;;  %490 = vst.msk [vmem:[%s841_s8 + $0x8] sm:$0xf] %vm487_vm4, %v471_v4  ;;  %vm431_vm14 = vcmp.ge.f32.partialorder %v411_v6, 0.0  ;;  %v377_v9 = vpop.f32.mrf.mxu0  ;;  %v387_v10 = vpop.f32.mrf.mxu1 }
  0xbc   : > { %494 = vst.msk [vmem:[%s841_s8 + $0x18] sm:$0xf] %vm487_vm4, %v475_v7  ;;  %v449_v11 = vmul.f32 0.2, %v411_v6  ;;  %v378_v12 = vadd.f32 %v830_v17, %v377_v9  ;;  %v388_v13 = vadd.f32 %v830_v17, %v387_v10 }
  0xbd   : > { %v461_v14 = vsel %vm425_vm13, %v396_v3, %v443_v8 }
  0xbe   : > { %v479_v15 = vpack.c.bf16 %v461_v14, %v461_v14  ;;  %v467_v16 = vsel %vm431_vm14, %v411_v6, %v449_v11  ;;  %vm418_vm15 = vcmp.ge.f32.partialorder %v378_v12, 0.0  ;;  %v436_v18 = vmul.f32 0.2, %v378_v12 }
  0xbf   : > { %v485_v19 = vpack.c.bf16 %v467_v16, %v467_v16  ;;  %vm422_vm0 = vcmp.ge.f32.partialorder %v388_v13, 0.0  ;;  %v440_v20 = vmul.f32 0.2, %v388_v13 }
  0xc0   : > { %498 = vst.msk [vmem:[%s841_s8 + $0x28] sm:$0xf] %vm487_vm4, %v479_v15  ;;  %v397_v21 = vpop.f32.mrf.mxu2  ;;  %v454_v22 = vsel %vm418_vm15, %v378_v12, %v436_v18  ;;  %v412_v23 = vpop.f32.mrf.mxu3 }
  0xc1   : > { %504 = vst.msk [vmem:[%s841_s8 + $0x40] sm:$0xf] %vm487_vm4, %v485_v19  ;;  %v398_v24 = vadd.f32 %v830_v17, %v397_v21  ;;  %v472_v25 = vpack.c.bf16 %v454_v22, %v454_v22  ;;  %v458_v26 = vsel %vm422_vm0, %v388_v13, %v440_v20  ;;  %v413_v27 = vadd.f32 %v830_v17, %v412_v23 }
  0xc2   : > { %v476_v28 = vpack.c.bf16 %v458_v26, %v458_v26 }
  0xc3   : > { %vm426_vm1 = vcmp.ge.f32.partialorder %v398_v24, 0.0  ;;  %v444_v29 = vmul.f32 0.2, %v398_v24  ;;  %491 = vst.msk [vmem:[%s841_s8 + $0xc] sm:$0xf] %vm487_vm4, %v472_v25  ;;  %vm432_vm2 = vcmp.ge.f32.partialorder %v413_v27, 0.0 }
  0xc4   : > { %495 = vst.msk [vmem:[%s841_s8 + $0x1c] sm:$0xf] %vm487_vm4, %v476_v28  ;;  %v450_v30 = vmul.f32 0.2, %v413_v27 }
  0xc5   : > { %v462_v31 = vsel %vm426_vm1, %v398_v24, %v444_v29 }
  0xc6   : > { %v480_v32 = vpack.c.bf16 %v462_v31, %v462_v31  ;;  %v468_v33 = vsel %vm432_vm2, %v413_v27, %v450_v30 }
  0xc7   : > { %v486_v34 = vpack.c.bf16 %v468_v33, %v468_v33 }
  0xc8   : > { %499 = vst.msk [vmem:[%s841_s8 + $0x2c] sm:$0xf] %vm487_vm4, %v480_v32  ;;  %v400_v35 = vpop.f32.mrf.mxu2 }
  0xc9   : > { %505 = vst.msk [vmem:[%s841_s8 + $0x44] sm:$0xf] %vm487_vm4, %v486_v34  ;;  %v401_v36 = vadd.f32 %v830_v17, %v400_v35 }
  0xcb   : > { %vm427_vm3 = vcmp.ge.f32.partialorder %v401_v36, 0.0  ;;  %v445_v37 = vmul.f32 0.2, %v401_v36 }
  0xcd   : > { %v463_v38 = vsel %vm427_vm3, %v401_v36, %v445_v37 }
  0xce   : > { %v481_v39 = vpack.c.bf16 %v463_v38, %v463_v38 }
  0xd0   : > { %500 = vst.msk [vmem:[%s841_s8 + $0x30] sm:$0xf] %vm487_vm4, %v481_v39  ;;  %v402_v40 = vpop.f32.mrf.mxu2 }
  0xd1   : > { %v403_v41 = vadd.f32 %v830_v17, %v402_v40 }
  0xd3   : > { %vm428_vm5 = vcmp.ge.f32.partialorder %v403_v41, 0.0  ;;  %v446_v42 = vmul.f32 0.2, %v403_v41 }
  0xd5   : > { %v464_v43 = vsel %vm428_vm5, %v403_v41, %v446_v42 }
  0xd6   : > { %v482_v44 = vpack.c.bf16 %v464_v43, %v464_v43 }
  0xd8   : > { %501 = vst.msk [vmem:[%s841_s8 + $0x34] sm:$0xf] %vm487_vm4, %v482_v44 }
  0xd9 PF: > { %s13_s14 = sadd.s32 1, %s755_s14   ;;  %s906_s12 = smov %s751_s13 }
  0xda   : > { %p10_p5 = scmp.ge.s32.totalorder %s13_s14, 4   ;;  %s907_s13 = smov %s909_s15 }
  0xdc   :  { %12 = sbr.rel (!%p10_p5) target bundleno = 2 (0x2), region = 68 }

// kernel: _lambda_.7
= control target key start
LH: loop header
LB: loop body
LE: loop exit
PB: predicated region body
PF: predicated region fallthrough
CT: control target
= control target key end

     0   :  { %s777_s12 = smov 0   ;;  %s779_s13 = smov 0   ;;  %s902_s0 = inlined_call_operand.vmem [shape: bf16[288,72], index: 0, kind: input, shape index: {}]   ;;  %s903_s1 = inlined_call_operand.vmem [shape: bf16[72,16], index: 1, kind: input, shape index: {}]   ;;  %s904_s2 = inlined_call_operand.vmem [shape: f32[1,16], index: 2, kind: input, shape index: {}]   ;;  %s905_s3 = inlined_call_operand.vmem [shape: bf16[288,16], index: 3, kind: output, shape index: {}]  }
   0x1   :  { %s781_s14 = smov 0  }
   0x2 LB: > { %s25_s15 = sadd.s32 1, %s751_s13  ;;  %p614_p0 = scmp.ge.s32.totalorder %s755_s14, 1  ;;  %s755_s14 = sphi %s781_s14, %s13_s14   ;;  %s751_s13 = sphi %s779_s13, %s907_s13   ;;  %s747_s12 = sphi %s777_s12, %s906_s12  }
   0x3   : > { %p27_p1 = scmp.ge.s32.totalorder %s25_s15, 2  ;;  %p169_p2 = scmp.lt.s32.totalorder %s755_s14, 3 }
   0x5   : > { %s909_s15 = smov (%p27_p1, %s25_s15), 0  ;;  %p170_p3 = pnand %p614_p0, %p169_p2 }
   0x6   : > { %s203_s18 = smul.u32 (!%p170_p3), 18, %s747_s12 }
   0x7   : > { %173 = sbr.rel (%p170_p3) target bundleno = 217 (0xd9), region = 32 }
   0x8   : > { %p204_p4 = scmp.lt.s32.totalorder (!%p170_p3), %s203_s18, 35 }
   0xc   : > { %v252_v0 = vld [vmem:[%s903_s1 + $0x20] sm:$0xf]  ;;  %vm357_vm0 = vcmask 1043456   ;;  %v692_v4 = vld [vmem:[%s903_s1 + $0x18] sm:$0xff]  ;;  %v691_v5 = vld [vmem:[%s903_s1 + $0x10] sm:$0xff]  ;;  %s911_s18 = smov (!%p204_p4, %s203_s18), 35 }
   0xd   : > { %v319_v1 = vunpack.c.l.b16 %v252_v0  ;;  %v690_v6 = vld [vmem:[%s903_s1 + $0x8] sm:$0xff]  ;;  %s615_s25 = sshll.u32 %s911_s18, 2  ;;  %v689_v7 = vld [vmem:[%s903_s1] sm:$0xff]  ;;  %vm329_vm1 = vcmask 588800   ;;  %vm487_vm4 = vcmask 125952  }
   0xe   : > { %s207_s30 = scalar_lea.vmem %s902_s0, %s615_s25  ;;  %v830_v17 = vld [vmem:[%s904_s2] ss:$0 sm:$0xff]  ;;  %s841_s8 = scalar_lea.vmem %s905_s3, %s615_s25 }
   0xf   : > { %v324_v2 = vpack.c.b16 %v319_v1, %v319_v1  ;;  %v684_v8 = vld [vmem:[%s207_s30 + $0x20] sm:$0xff]  ;;  %v687_v9 = vld [vmem:[%s207_s30 + $0x38] sm:$0xff]  ;;  %v682_v11 = vld [vmem:[%s207_s30 + $0x10] sm:$0xff] }
  0x10   : > { %v680_v10 = vld [vmem:[%s207_s30] sm:$0xff]  ;;  %v685_v12 = vld [vmem:[%s207_s30 + $0x28] sm:$0xff]  ;;  %v683_v15 = vld [vmem:[%s207_s30 + $0x18] sm:$0xff] }
  0x11   : > { %v359_v3 = vsel %vm357_vm0, %v324_v2, 0  ;;  %v688_v13 = vld [vmem:[%s207_s30 + $0x40] sm:$0xff]  ;;  %v681_v14 = vld [vmem:[%s207_s30 + $0x8] sm:$0xff]  ;;  %v686_v16 = vld [vmem:[%s207_s30 + $0x30] sm:$0xff] }
  0x12   : > { %694 = vmatpush.bf16.msra.mxu2 %v359_v3  ;;  %695 = vmatpush.bf16.msra.mxu3 %v359_v3 }
  0x13   : > { %364 = vmatpush.bf16.msra.mxu0 %v359_v3  ;;  %693 = vmatpush.bf16.msra.mxu1 %v359_v3 }
  0x16   : > { %697 = vmatpush.bf16.msra.mxu2 %v692_v4  ;;  %698 = vmatpush.bf16.msra.mxu3 %v692_v4 }
  0x17   : > { %365 = vmatpush.bf16.msra.mxu0 %v692_v4  ;;  %696 = vmatpush.bf16.msra.mxu1 %v692_v4 }
  0x1a   : > { %700 = vmatpush.bf16.msra.mxu2 %v691_v5  ;;  %701 = vmatpush.bf16.msra.mxu3 %v691_v5 }
  0x1b   : > { %366 = vmatpush.bf16.msra.mxu0 %v691_v5  ;;  %699 = vmatpush.bf16.msra.mxu1 %v691_v5 }
  0x1e   : > { %703 = vmatpush.bf16.msra.mxu2 %v690_v6  ;;  %704 = vmatpush.bf16.msra.mxu3 %v690_v6 }
  0x1f   : > { %367 = vmatpush.bf16.msra.mxu0 %v690_v6  ;;  %702 = vmatpush.bf16.msra.mxu1 %v690_v6 }
  0x22   : > { %706 = vmatpush.bf16.msra.mxu2 %v689_v7  ;;  %707 = vmatpush.bf16.msra.mxu3 %v689_v7 }
  0x23   : > { %368 = vmatpush.bf16.msra.mxu0 %v689_v7  ;;  %705 = vmatpush.bf16.msra.mxu1 %v689_v7 }
  0x25   : > { %673 = vmatmul.msk.bf16.vlgmr.msra.gmra.mxu2 %vm329_vm1, %v684_v8  ;;  %676 = vmatmul.msk.bf16.vlgmr.msra.gmra.mxu3 %vm329_vm1, %v687_v9 }
  0x26   : > { %669 = vmatmul.msk.bf16.vlgmr.msra.gmra.mxu0 %vm329_vm1, %v680_v10  ;;  %671 = vmatmul.msk.bf16.vlgmr.msra.gmra.mxu1 %vm329_vm1, %v682_v11 }
  0x35   : > { %674 = vmatmul.msk.bf16.gmra.mxu2 %vm329_vm1, %v685_v12  ;;  %677 = vmatmul.msk.bf16.gmra.mxu3 %vm329_vm1, %v688_v13 }
  0x36   : > { %670 = vmatmul.msk.bf16.gmra.mxu0 %vm329_vm1, %v681_v14  ;;  %672 = vmatmul.msk.bf16.gmra.mxu1 %vm329_vm1, %v683_v15 }
  0x45   : > { %675 = vmatmul.msk.bf16.gmra.mxu2 %vm329_vm1, %v686_v16 }
  0xa3   : > { %v370_v18 = vpop.f32.mrf.mxu0  ;;  %v380_v19 = vpop.f32.mrf.mxu1 }
  0xa4   : > { %v371_v20 = vadd.f32 %v830_v17, %v370_v18  ;;  %v381_v21 = vadd.f32 %v830_v17, %v380_v19 }
  0xa6   : > { %vm415_vm2 = vcmp.ge.f32.partialorder %v371_v20, 0.0  ;;  %v433_v22 = vmul.f32 0.2, %v371_v20  ;;  %vm419_vm3 = vcmp.ge.f32.partialorder %v381_v21, 0.0  ;;  %v437_v23 = vmul.f32 0.2, %v381_v21 }
  0xa8   : > { %v390_v24 = vpop.f32.mrf.mxu2  ;;  %v451_v25 = vsel %vm415_vm2, %v371_v20, %v433_v22  ;;  %v455_v26 = vsel %vm419_vm3, %v381_v21, %v437_v23  ;;  %v405_v27 = vpop.f32.mrf.mxu3 }
  0xa9   : > { %v391_v28 = vadd.f32 %v830_v17, %v390_v24  ;;  %v469_v29 = vpack.c.bf16 %v451_v25, %v451_v25  ;;  %v473_v30 = vpack.c.bf16 %v455_v26, %v455_v26  ;;  %v406_v31 = vadd.f32 %v830_v17, %v405_v27 }
  0xab   : > { %vm423_vm5 = vcmp.ge.f32.partialorder %v391_v28, 0.0  ;;  %v441_v32 = vmul.f32 0.2, %v391_v28  ;;  %488 = vst.msk [vmem:[%s841_s8] sm:$0xf] %vm487_vm4, %v469_v29  ;;  %vm429_vm6 = vcmp.ge.f32.partialorder %v406_v31, 0.0  ;;  %v372_v33 = vpop.f32.mrf.mxu0  ;;  %v382_v34 = vpop.f32.mrf.mxu1 }
  0xac   : > { %492 = vst.msk [vmem:[%s841_s8 + $0x10] sm:$0xf] %vm487_vm4, %v473_v30  ;;  %v447_v35 = vmul.f32 0.2, %v406_v31  ;;  %v373_v36 = vadd.f32 %v830_v17, %v372_v33  ;;  %v383_v37 = vadd.f32 %v830_v17, %v382_v34 }
  0xad   : > { %v459_v38 = vsel %vm423_vm5, %v391_v28, %v441_v32 }
  0xae   : > { %v477_v39 = vpack.c.bf16 %v459_v38, %v459_v38  ;;  %v465_v40 = vsel %vm429_vm6, %v406_v31, %v447_v35  ;;  %vm416_vm7 = vcmp.ge.f32.partialorder %v373_v36, 0.0  ;;  %v434_v41 = vmul.f32 0.2, %v373_v36 }
  0xaf   : > { %v483_v42 = vpack.c.bf16 %v465_v40, %v465_v40  ;;  %vm420_vm8 = vcmp.ge.f32.partialorder %v383_v37, 0.0  ;;  %v438_v43 = vmul.f32 0.2, %v383_v37 }
  0xb0   : > { %496 = vst.msk [vmem:[%s841_s8 + $0x20] sm:$0xf] %vm487_vm4, %v477_v39  ;;  %v392_v44 = vpop.f32.mrf.mxu2  ;;  %v452_v45 = vsel %vm416_vm7, %v373_v36, %v434_v41  ;;  %v407_v46 = vpop.f32.mrf.mxu3 }
  0xb1   : > { %502 = vst.msk [vmem:[%s841_s8 + $0x38] sm:$0xf] %vm487_vm4, %v483_v42  ;;  %v393_v47 = vadd.f32 %v830_v17, %v392_v44  ;;  %v470_v48 = vpack.c.bf16 %v452_v45, %v452_v45  ;;  %v456_v49 = vsel %vm420_vm8, %v383_v37, %v438_v43  ;;  %v408_v50 = vadd.f32 %v830_v17, %v407_v46 }
  0xb2   : > { %v474_v51 = vpack.c.bf16 %v456_v49, %v456_v49 }
  0xb3   : > { %vm424_vm9 = vcmp.ge.f32.partialorder %v393_v47, 0.0  ;;  %v442_v52 = vmul.f32 0.2, %v393_v47  ;;  %489 = vst.msk [vmem:[%s841_s8 + $0x4] sm:$0xf] %vm487_vm4, %v470_v48  ;;  %vm430_vm10 = vcmp.ge.f32.partialorder %v408_v50, 0.0  ;;  %v375_v53 = vpop.f32.mrf.mxu0  ;;  %v385_v54 = vpop.f32.mrf.mxu1 }
  0xb4   : > { %493 = vst.msk [vmem:[%s841_s8 + $0x14] sm:$0xf] %vm487_vm4, %v474_v51  ;;  %v448_v55 = vmul.f32 0.2, %v408_v50  ;;  %v376_v56 = vadd.f32 %v830_v17, %v375_v53  ;;  %v386_v57 = vadd.f32 %v830_v17, %v385_v54 }
  0xb5   : > { %v460_v58 = vsel %vm424_vm9, %v393_v47, %v442_v52 }
  0xb6   : > { %v478_v59 = vpack.c.bf16 %v460_v58, %v460_v58  ;;  %v466_v60 = vsel %vm430_vm10, %v408_v50, %v448_v55  ;;  %vm417_vm11 = vcmp.ge.f32.partialorder %v376_v56, 0.0  ;;  %v435_v61 = vmul.f32 0.2, %v376_v56 }
  0xb7   : > { %v484_v62 = vpack.c.bf16 %v466_v60, %v466_v60  ;;  %vm421_vm12 = vcmp.ge.f32.partialorder %v386_v57, 0.0  ;;  %v439_v63 = vmul.f32 0.2, %v386_v57 }
  0xb8   : > { %497 = vst.msk [vmem:[%s841_s8 + $0x24] sm:$0xf] %vm487_vm4, %v478_v59  ;;  %v395_v0 = vpop.f32.mrf.mxu2  ;;  %v453_v1 = vsel %vm417_vm11, %v376_v56, %v435_v61  ;;  %v410_v2 = vpop.f32.mrf.mxu3 }
  0xb9   : > { %503 = vst.msk [vmem:[%s841_s8 + $0x3c] sm:$0xf] %vm487_vm4, %v484_v62  ;;  %v396_v3 = vadd.f32 %v830_v17, %v395_v0  ;;  %v471_v4 = vpack.c.bf16 %v453_v1, %v453_v1  ;;  %v457_v5 = vsel %vm421_vm12, %v386_v57, %v439_v63  ;;  %v411_v6 = vadd.f32 %v830_v17, %v410_v2 }
  0xba   : > { %v475_v7 = vpack.c.bf16 %v457_v5, %v457_v5 }
  0xbb   : > { %vm425_vm13 = vcmp.ge.f32.partialorder %v396_v3, 0.0  ;;  %v443_v8 = vmul.f32 0.2, %v396_v3  ;;  %490 = vst.msk [vmem:[%s841_s8 + $0x8] sm:$0xf] %vm487_vm4, %v471_v4  ;;  %vm431_vm14 = vcmp.ge.f32.partialorder %v411_v6, 0.0  ;;  %v377_v9 = vpop.f32.mrf.mxu0  ;;  %v387_v10 = vpop.f32.mrf.mxu1 }
  0xbc   : > { %494 = vst.msk [vmem:[%s841_s8 + $0x18] sm:$0xf] %vm487_vm4, %v475_v7  ;;  %v449_v11 = vmul.f32 0.2, %v411_v6  ;;  %v378_v12 = vadd.f32 %v830_v17, %v377_v9  ;;  %v388_v13 = vadd.f32 %v830_v17, %v387_v10 }
  0xbd   : > { %v461_v14 = vsel %vm425_vm13, %v396_v3, %v443_v8 }
  0xbe   : > { %v479_v15 = vpack.c.bf16 %v461_v14, %v461_v14  ;;  %v467_v16 = vsel %vm431_vm14, %v411_v6, %v449_v11  ;;  %vm418_vm15 = vcmp.ge.f32.partialorder %v378_v12, 0.0  ;;  %v436_v18 = vmul.f32 0.2, %v378_v12 }
  0xbf   : > { %v485_v19 = vpack.c.bf16 %v467_v16, %v467_v16  ;;  %vm422_vm0 = vcmp.ge.f32.partialorder %v388_v13, 0.0  ;;  %v440_v20 = vmul.f32 0.2, %v388_v13 }
  0xc0   : > { %498 = vst.msk [vmem:[%s841_s8 + $0x28] sm:$0xf] %vm487_vm4, %v479_v15  ;;  %v397_v21 = vpop.f32.mrf.mxu2  ;;  %v454_v22 = vsel %vm418_vm15, %v378_v12, %v436_v18  ;;  %v412_v23 = vpop.f32.mrf.mxu3 }
  0xc1   : > { %504 = vst.msk [vmem:[%s841_s8 + $0x40] sm:$0xf] %vm487_vm4, %v485_v19  ;;  %v398_v24 = vadd.f32 %v830_v17, %v397_v21  ;;  %v472_v25 = vpack.c.bf16 %v454_v22, %v454_v22  ;;  %v458_v26 = vsel %vm422_vm0, %v388_v13, %v440_v20  ;;  %v413_v27 = vadd.f32 %v830_v17, %v412_v23 }
  0xc2   : > { %v476_v28 = vpack.c.bf16 %v458_v26, %v458_v26 }
  0xc3   : > { %vm426_vm1 = vcmp.ge.f32.partialorder %v398_v24, 0.0  ;;  %v444_v29 = vmul.f32 0.2, %v398_v24  ;;  %491 = vst.msk [vmem:[%s841_s8 + $0xc] sm:$0xf] %vm487_vm4, %v472_v25  ;;  %vm432_vm2 = vcmp.ge.f32.partialorder %v413_v27, 0.0 }
  0xc4   : > { %495 = vst.msk [vmem:[%s841_s8 + $0x1c] sm:$0xf] %vm487_vm4, %v476_v28  ;;  %v450_v30 = vmul.f32 0.2, %v413_v27 }
  0xc5   : > { %v462_v31 = vsel %vm426_vm1, %v398_v24, %v444_v29 }
  0xc6   : > { %v480_v32 = vpack.c.bf16 %v462_v31, %v462_v31  ;;  %v468_v33 = vsel %vm432_vm2, %v413_v27, %v450_v30 }
  0xc7   : > { %v486_v34 = vpack.c.bf16 %v468_v33, %v468_v33 }
  0xc8   : > { %499 = vst.msk [vmem:[%s841_s8 + $0x2c] sm:$0xf] %vm487_vm4, %v480_v32  ;;  %v400_v35 = vpop.f32.mrf.mxu2 }
  0xc9   : > { %505 = vst.msk [vmem:[%s841_s8 + $0x44] sm:$0xf] %vm487_vm4, %v486_v34  ;;  %v401_v36 = vadd.f32 %v830_v17, %v400_v35 }
  0xcb   : > { %vm427_vm3 = vcmp.ge.f32.partialorder %v401_v36, 0.0  ;;  %v445_v37 = vmul.f32 0.2, %v401_v36 }
  0xcd   : > { %v463_v38 = vsel %vm427_vm3, %v401_v36, %v445_v37 }
  0xce   : > { %v481_v39 = vpack.c.bf16 %v463_v38, %v463_v38 }
  0xd0   : > { %500 = vst.msk [vmem:[%s841_s8 + $0x30] sm:$0xf] %vm487_vm4, %v481_v39  ;;  %v402_v40 = vpop.f32.mrf.mxu2 }
  0xd1   : > { %v403_v41 = vadd.f32 %v830_v17, %v402_v40 }
  0xd3   : > { %vm428_vm5 = vcmp.ge.f32.partialorder %v403_v41, 0.0  ;;  %v446_v42 = vmul.f32 0.2, %v403_v41 }
  0xd5   : > { %v464_v43 = vsel %vm428_vm5, %v403_v41, %v446_v42 }
  0xd6   : > { %v482_v44 = vpack.c.bf16 %v464_v43, %v464_v43 }
  0xd8   : > { %501 = vst.msk [vmem:[%s841_s8 + $0x34] sm:$0xf] %vm487_vm4, %v482_v44 }
  0xd9 PF: > { %s13_s14 = sadd.s32 1, %s755_s14   ;;  %s906_s12 = smov %s751_s13 }
  0xda   : > { %p10_p5 = scmp.ge.s32.totalorder %s13_s14, 4   ;;  %s907_s13 = smov %s909_s15 }
  0xdc   :  { %12 = sbr.rel (!%p10_p5) target bundleno = 2 (0x2), region = 68 }

// kernel: _lambda_.8
= control target key start
LH: loop header
LB: loop body
LE: loop exit
PB: predicated region body
PF: predicated region fallthrough
CT: control target
= control target key end

     0   :  { %s1074_s12 = smov 0   ;;  %s1076_s13 = smov 0   ;;  %s1252_s0 = inlined_call_operand.vmem [shape: bf16[72,144], index: 0, kind: input, shape index: {}]   ;;  %s1253_s1 = inlined_call_operand.vmem [shape: bf16[144,16], index: 1, kind: input, shape index: {}]   ;;  %s1254_s2 = inlined_call_operand.vmem [shape: f32[1,16], index: 2, kind: input, shape index: {}]   ;;  %s1255_s3 = inlined_call_operand.vmem [shape: bf16[72,16], index: 3, kind: output, shape index: {}]  }
   0x1   :  { %s1078_s14 = smov 0   ;;  %s1080_s15 = smov 0  }
   0x2   :  { %s1082_s16 = smov 0  }
   0x3 LB: > { %s720_s17 = sadd.s32 4294967295, %s1020_s16   ;;  %s25_s18 = sadd.s32 1, %s1016_s15  ;;  %s1020_s16 = sphi %s1082_s16, %s13_s16   ;;  %s1016_s15 = sphi %s1080_s15, %s1263_s15   ;;  %s1012_s14 = sphi %s1078_s14, %s1262_s14   ;;  %s1008_s13 = sphi %s1076_s13, %s1261_s13   ;;  %s1004_s12 = sphi %s1074_s12, %s1260_s12  }
   0x4   : > { %p27_p0 = scmp.ge.s32.totalorder %s25_s18, 2  ;;  %s112_s19 = sadd.s32 1, %s1008_s13 }
   0x5   : > { %p122_p1 = scmp.ne.s32.totalorder %s1008_s13, %s1004_s12  ;;  %p123_p2 = scmp.eq.s32.totalorder %s720_s17, 1 }
   0x6   : > { %s1265_s18 = smov (%p27_p0, %s25_s18), 0  ;;  %p726_p4 = scmp.ge.s32.totalorder %s1020_s16, 1 }
   0x7   : > { %p1106_p3 = por %p123_p2, %p122_p1  ;;  %s107_s21 = ssub.s32 %s1016_s15, %s1265_s18 }
   0x8   : > { %p180_p5 = scmp.lt.s32.totalorder %s1020_s16, 3  ;;  %p110_p6 = scmp.eq.s32.totalorder %s107_s21, 0 }
   0xa   : > { %p181_p7 = pnand %p726_p4, %p180_p5 }
   0xb   : > { %s1115_s22 = scalar_select %p110_p6, %s1008_s13, %s112_s19  }
   0xc   : > { %184 = sbr.rel (%p181_p7) target bundleno = 257 (0x101), region = 32  ;;  %s213_s4 = sand.u32 (!%p181_p7), 1, %s1004_s12  }
   0xd   : > { %s1124_s27 = smul.u32 (!%p181_p7), 6, %s1012_s14 }
   0xe   : > { %s837_s5 = smul.u32 (!%p181_p7), 24, %s213_s4 }
   0xf   : > { %p222_p8 = scmp.lt.s32.totalorder (!%p181_p7), %s1124_s27, 8 }
  0x11   : > { %v818_v0 = vld [vmem:[%s1253_s1 + $0x38] sm:$0xff]  ;;  %v819_v1 = vld [vmem:[%s1253_s1 + $0x40] sm:$0xff]  ;;  %v817_v2 = vld [vmem:[%s1253_s1 + $0x30] sm:$0xff]  ;;  %s223_s30 = scalar_select %p222_p8, %s1124_s27, 8  ;;  %vm355_vm0 = vcmask 130048   ;;  %vm437_vm2 = vcmask 125952  }
  0x12   : > { %365 = vmatpush.bf16.msra.mxu0 %v818_v0  ;;  %821 = vmatpush.bf16.msra.mxu2 %v818_v0  ;;  %v816_v3 = vld [vmem:[%s1253_s1 + $0x28] sm:$0xff]  ;;  %v815_v7 = vld [vmem:[%s1253_s1 + $0x20] sm:$0xff]  ;;  %v814_v8 = vld [vmem:[%s1253_s1 + $0x18] sm:$0xff]  ;;  %s452_s12 = ssub.s32 (%p1106_p3), 9, %s1124_s27  ;;  %s820_s7 = smul.u32 (%p1106_p3), 24, %s1012_s14 }
  0x13   : > { %822 = vmatpush.bf16.msra.mxu3 %v818_v0  ;;  %396 = vmatpush.bf16.msra.mxu1 %v819_v1  ;;  %s804_s6 = sshll.u32 %s223_s30, 3  ;;  %v813_v9 = vld [vmem:[%s1253_s1 + $0x10] sm:$0xff]  ;;  %v812_v12 = vld [vmem:[%s1253_s1 + $0x8] sm:$0xff]  ;;  %v811_v14 = vld [vmem:[%s1253_s1] sm:$0xff]  ;;  %p453_p9 = scmp.lt.s32.totalorder (%p1106_p3), %s452_s12, 6 }
  0x14   : > { %s1137_s9 = scalar_lea.vmem %s1252_s0, %s804_s6  ;;  %v943_v30 = vld [vmem:[%s1254_s2] ss:$0 sm:$0xff]  ;;  %s1173_s6 = scalar_lea.vmem [#allocation2], %s837_s5  }
  0x15   : > { %v805_v4 = vld [vmem:[%s1137_s9 + $0x4] sm:$0xf]  ;;  %v733_v5 = vld [vmem:[%s1137_s9 + $0x8] sm:$0xf0]  ;;  %v807_v10 = vld [vmem:[%s1137_s9 + $0x14] sm:$0xf]  ;;  %s1194_s10 = scalar_lea.vmem (%p1106_p3), %s1255_s3, %s820_s7  }
  0x16   : > { %366 = vmatpush.bf16.msra.mxu0 %v817_v2  ;;  %823 = vmatpush.bf16.msra.mxu2 %v817_v2  ;;  %v736_v6 = vor.u32 %v805_v4, %v733_v5  ;;  %v741_v11 = vld [vmem:[%s1137_s9 + $0x18] sm:$0xf0]  ;;  %v731_v15 = vld [vmem:[%s1137_s9] sm:$0xf]  ;;  %v806_v16 = vld [vmem:[%s1137_s9 + $0x4] sm:$0xf0] }
  0x17   : > { %824 = vmatpush.bf16.msra.mxu3 %v817_v2  ;;  %v744_v13 = vor.u32 %v807_v10, %v741_v11  ;;  %v739_v17 = vld [vmem:[%s1137_s9 + $0x10] sm:$0xf]  ;;  %v808_v18 = vld [vmem:[%s1137_s9 + $0x14] sm:$0xf0]  ;;  %v747_v19 = vld [vmem:[%s1137_s9 + $0x20] sm:$0xf]  ;;  %v732_v21 = vor.u32 %v806_v16, %v731_v15 }
  0x18   : > { %789 = vmatmul.msk.bf16.vlgmr.msra.gmra.mxu1 %vm355_vm0, %v736_v6  ;;  %v810_v20 = vld [vmem:[%s1137_s9 + $0x24] sm:$0xf0]  ;;  %v740_v22 = vor.u32 %v808_v18, %v739_v17  ;;  %v809_v24 = vld [vmem:[%s1137_s9 + $0x24] sm:$0xf]  ;;  %v749_v25 = vld [vmem:[%s1137_s9 + $0x28] sm:$0xf0] }
  0x19   : > { %v748_v23 = vor.u32 %v810_v20, %v747_v19  ;;  %v752_v26 = vor.u32 %v809_v24, %v749_v25 }
  0x1a   : > { %367 = vmatpush.bf16.msra.mxu0 %v816_v3  ;;  %825 = vmatpush.bf16.msra.mxu2 %v816_v3 }
  0x1b   : > { %826 = vmatpush.bf16.msra.mxu3 %v816_v3 }
  0x1e   : > { %368 = vmatpush.bf16.msra.mxu0 %v815_v7  ;;  %827 = vmatpush.bf16.msra.mxu2 %v815_v7 }
  0x1f   : > { %828 = vmatpush.bf16.msra.mxu3 %v815_v7 }
  0x22   : > { %369 = vmatpush.bf16.msra.mxu0 %v814_v8  ;;  %829 = vmatpush.bf16.msra.mxu2 %v814_v8 }
  0x23   : > { %830 = vmatpush.bf16.msra.mxu3 %v814_v8 }
  0x26   : > { %370 = vmatpush.bf16.msra.mxu0 %v813_v9  ;;  %831 = vmatpush.bf16.msra.mxu2 %v813_v9 }
  0x27   : > { %832 = vmatpush.bf16.msra.mxu3 %v813_v9 }
  0x28   : > { %790 = vmatmul.msk.bf16.gmra.mxu1 %vm355_vm0, %v744_v13 }
  0x2a   : > { %371 = vmatpush.bf16.msra.mxu0 %v812_v12  ;;  %833 = vmatpush.bf16.msra.mxu2 %v812_v12 }
  0x2b   : > { %834 = vmatpush.bf16.msra.mxu3 %v812_v12 }
  0x2e   : > { %372 = vmatpush.bf16.msra.mxu0 %v811_v14  ;;  %835 = vmatpush.bf16.msra.mxu2 %v811_v14 }
  0x2f   : > { %836 = vmatpush.bf16.msra.mxu3 %v811_v14 }
  0x31   : > { %373 = vmatmul.bf16.vlgmr.msra.gmra.mxu0 %v732_v21  ;;  %378 = vmatmul.bf16.vlgmr.msra.gmra.mxu2 %v740_v22 }
  0x32   : > { %383 = vmatmul.bf16.vlgmr.msra.gmra.mxu3 %v748_v23 }
  0x38   : > { %791 = vmatmul.msk.bf16.gmra.mxu1 %vm355_vm0, %v752_v26 }
  0x95   : > { %v398_v27 = vpop.f32.mrf.mxu1 }
  0x9d   : > { %v400_v28 = vpop.f32.mrf.mxu1 }
  0xa5   : > { %v403_v29 = vpop.f32.mrf.mxu1 }
  0xad   : > { %v405_v33 = vpop.f32.mrf.mxu1 }
  0xae   : > { %v374_v31 = vpop.f32.mrf.mxu0 }
  0xaf   : > { %v375_v32 = vadd.f32 %v943_v30, %v374_v31 }
  0xb1   : > { %v399_v34 = vadd.f32 %v398_v27, %v375_v32 }
  0xb3   : > { %vm413_vm1 = vcmp.ge.f32.partialorder %v399_v34, 0.0  ;;  %v419_v35 = vmul.f32 0.2, %v399_v34 }
  0xb4   : > { %v379_v36 = vpop.f32.mrf.mxu2 }
  0xb5   : > { %v425_v37 = vsel %vm413_vm1, %v399_v34, %v419_v35  ;;  %v380_v38 = vadd.f32 %v943_v30, %v379_v36  ;;  %v384_v39 = vpop.f32.mrf.mxu3  ;;  %v408_v45 = vpop.f32.mrf.mxu1 }
  0xb6   : > { %v431_v40 = vpack.c.bf16 %v425_v37, %v425_v37  ;;  %v385_v41 = vadd.f32 %v943_v30, %v384_v39  ;;  %v376_v42 = vpop.f32.mrf.mxu0 }
  0xb7   : > { %v404_v43 = vadd.f32 %v403_v29, %v380_v38  ;;  %v377_v44 = vadd.f32 %v943_v30, %v376_v42 }
  0xb8   : > { %438 = vst.msk [vmem:[%s1173_s6] sm:$0xf] %vm437_vm2, %v431_v40  ;;  %v409_v48 = vadd.f32 %v408_v45, %v385_v41 }
  0xb9   : > { %vm415_vm3 = vcmp.ge.f32.partialorder %v404_v43, 0.0  ;;  %v421_v46 = vmul.f32 0.2, %v404_v43  ;;  %v401_v47 = vadd.f32 %v400_v28, %v377_v44 }
  0xba   : > { %vm417_vm5 = vcmp.ge.f32.partialorder %v409_v48, 0.0  ;;  %v423_v52 = vmul.f32 0.2, %v409_v48 }
  0xbb   : > { %v427_v49 = vsel %vm415_vm3, %v404_v43, %v421_v46  ;;  %vm414_vm4 = vcmp.ge.f32.partialorder %v401_v47, 0.0  ;;  %v420_v50 = vmul.f32 0.2, %v401_v47 }
  0xbc   : > { %v433_v51 = vpack.c.bf16 %v427_v49, %v427_v49  ;;  %v381_v53 = vpop.f32.mrf.mxu2  ;;  %v429_v58 = vsel %vm417_vm5, %v409_v48, %v423_v52 }
  0xbd   : > { %v426_v54 = vsel %vm414_vm4, %v401_v47, %v420_v50  ;;  %v382_v55 = vadd.f32 %v943_v30, %v381_v53  ;;  %v386_v56 = vpop.f32.mrf.mxu3  ;;  %v435_v59 = vpack.c.bf16 %v429_v58, %v429_v58  ;;  %v410_v62 = vpop.f32.mrf.mxu1 }
  0xbe   : > { %440 = vst.msk [vmem:[%s1173_s6 + $0x8] sm:$0xf] %vm437_vm2, %v433_v51  ;;  %v432_v57 = vpack.c.bf16 %v426_v54, %v426_v54  ;;  %v387_v61 = vadd.f32 %v943_v30, %v386_v56 }
  0xbf   : > { %v406_v60 = vadd.f32 %v405_v33, %v382_v55  ;;  %442 = vst.msk [vmem:[%s1173_s6 + $0x10] sm:$0xf] %vm437_vm2, %v435_v59 }
  0xc0   : > { %439 = vst.msk [vmem:[%s1173_s6 + $0x4] sm:$0xf] %vm437_vm2, %v432_v57  ;;  %v411_v0 = vadd.f32 %v410_v62, %v387_v61 }
  0xc1   : > { %vm416_vm6 = vcmp.ge.f32.partialorder %v406_v60, 0.0  ;;  %v422_v63 = vmul.f32 0.2, %v406_v60 }
  0xc2   : > { %vm418_vm7 = vcmp.ge.f32.partialorder %v411_v0, 0.0  ;;  %v424_v2 = vmul.f32 0.2, %v411_v0 }
  0xc3   : > { %v428_v1 = vsel %vm416_vm6, %v406_v60, %v422_v63  ;;  %450 = sbr.rel (!%p1106_p3) target bundleno = 257 (0x101), region = 36 }
  0xc4   : > { %v434_v3 = vpack.c.bf16 %v428_v1, %v428_v1  ;;  %v430_v4 = vsel %vm418_vm7, %v411_v0, %v424_v2 }
  0xc5   : > { %v436_v5 = vpack.c.bf16 %v430_v4, %v430_v4 }
  0xc6   : > { %441 = vst.msk [vmem:[%s1173_s6 + $0xc] sm:$0xf] %vm437_vm2, %v434_v3 }
  0xc7   : > { %443 = vst.msk [vmem:[%s1173_s6 + $0x14] sm:$0xf] %vm437_vm2, %v436_v5 }
  0xc8   : > { %s1267_s12 = smov (!%p453_p9, %s452_s12), 6 }
  0xc9   : > { %s792_s11 = sshll.u32 %s1267_s12, 2 }
  0xca   : > { %p795_p10 = scmp.eq.s32.totalorder %s792_s11, 0 }
  0xcb   : > { %944 = sdivrem.u32 (!%p795_p10), %s1267_s12, 6 }
  0xcc   : > { %462 = sbr.rel (%p795_p10) target bundleno = 257 (0x101), region = 40 }
  0xd4   : > { %s1200_s20 = spop.drf %944 }
  0xd5   : > { %s946_s17 = spop.drf %944  ;;  %p796_p11 = scmp.le.s32.totalorder %s1200_s20, 0 }
  0xd6   : > { %s1257_s14 = smov (!%p796_p11), %s1194_s10  ;;  %s1258_s27 = smov (!%p796_p11), %s1173_s6 }
  0xd7   : > { %650 = sbr.rel (%p796_p11) target bundleno = 231 (0xe7), region = 118  ;;  %s1209_s19 = smov (!%p796_p11), 0  }
  0xd8   : > { %s1211_s21 = smov (!%p796_p11), 0  }
  0xdc LB: >> { %v480_v6 = vld [vmem:[%s1028_s27] sm:$0xf]  ;;  %v482_v7 = vld [vmem:[%s1028_s27 + $0x4] sm:$0xf]  ;;  %v484_v8 = vld [vmem:[%s1028_s27 + $0x8] sm:$0xf]  ;;  %s1036_s21 = sphi %s1211_s21, %s474_s21   ;;  %s1032_s19 = sphi %s1209_s19, %s1259_s19   ;;  %s1028_s27 = sphi %s1258_s27, %s497_s27   ;;  %s1024_s14 = sphi %s1257_s14, %s498_s14  }
  0xdd   : >> { %481 = vst [vmem:[%s1024_s14] sm:$0xf] %v480_v6  ;;  %v486_v9 = vld [vmem:[%s1028_s27 + $0xc] sm:$0xf]  ;;  %s492_s23 = sadd.s32 1, %s1032_s19  ;;  %v488_v10 = vld [vmem:[%s1028_s27 + $0x10] sm:$0xf] }
  0xde   : >> { %483 = vst [vmem:[%s1024_s14 + $0x4] sm:$0xf] %v482_v7  ;;  %p493_p12 = scmp.ge.s32.totalorder %s492_s23, %s1200_s20  ;;  %v490_v11 = vld [vmem:[%s1028_s27 + $0x14] sm:$0xf]  ;;  %s474_s21 = sadd.s32 1, %s1036_s21  }
  0xdf   : >> { %485 = vst [vmem:[%s1024_s14 + $0x8] sm:$0xf] %v484_v8  ;;  %p473_p13 = scmp.ge.s32.totalorder %s474_s21, %s1200_s20 }
  0xe0   : >> { %487 = vst [vmem:[%s1024_s14 + $0xc] sm:$0xf] %v486_v9  ;;  %s1269_s23 = smov (%p493_p12, %s492_s23), 0 }
  0xe1   : >> { %489 = vst [vmem:[%s1024_s14 + $0x10] sm:$0xf] %v488_v10  ;;  %s495_s24 = smul.u32 24, %s1269_s23  ;;  %s1259_s19 = smov %s1269_s23 }
  0xe2   : >> { %491 = vst [vmem:[%s1024_s14 + $0x14] sm:$0xf] %v490_v11  ;;  %476 = sbr.rel (!%p473_p13) target bundleno = 220 (0xdc), region = 124 }
  0xe3   : >> { %s497_s27 = scalar_lea.vmem %s1173_s6, %s495_s24 [#allocation2]   ;;  %s498_s14 = scalar_lea.vmem %s1194_s10, %s495_s24  }
  0xe7 PF: > { %947 = sdivrem.u32 %s1267_s12, 6 }
  0xe8   : > { %s797_s25 = smul.u32 24, %s1200_s20 }
  0xea   : > { %s1232_s26 = scalar_lea.vmem %s1173_s6, %s797_s25 [#allocation2]   ;;  %s505_s28 = scalar_lea.vmem %s1194_s10, %s797_s25  }
  0xf0   : > { %s948_s29 = spop.drf %947 }
  0xf1   : > { %s949_s30 = spop.drf %947 }
  0xf2   : > { %p799_p0 = scmp.le.s32.totalorder %s949_s30, 0 }
  0xf3   : > { %s1038_s4 = smov (!%p799_p0), %s505_s28   ;;  %s1042_s5 = smov (!%p799_p0), %s1232_s26  }
  0xf4   : > { %664 = sbr.rel (%p799_p0) target bundleno = 257 (0x101), region = 129  ;;  %s1046_s7 = smov (!%p799_p0), 0  }
  0xf5   : > { %s1050_s8 = smov (!%p799_p0), 0  }
  0xf9 LB: >> { %v515_v12 = vld [vmem:[%s1044_s5] sm:$0xf]  ;;  %s517_s6 = sadd.s32 1, %s1048_s7  ;;  %s509_s8 = sadd.s32 1, %s1052_s8   ;;  %s1052_s8 = sphi %s1050_s8, %s509_s8   ;;  %s1048_s7 = sphi %s1046_s7, %s1047_s7   ;;  %s1044_s5 = sphi %s1042_s5, %s522_s5   ;;  %s1040_s4 = sphi %s1038_s4, %s523_s4  }
  0xfa   : >> { %516 = vst [vmem:[%s1040_s4] sm:$0xf] %v515_v12  ;;  %p518_p1 = scmp.ge.s32.totalorder %s517_s6, %s949_s30  ;;  %p508_p2 = scmp.ge.s32.totalorder %s509_s8, %s949_s30 }
  0xfc   : >> { %s1271_s6 = smov (%p518_p1, %s517_s6), 0  ;;  %511 = sbr.rel (!%p508_p2) target bundleno = 249 (0xf9), region = 135 }
  0xfd   : >> { %s800_s12 = sshll.u32 %s1271_s6, 2  ;;  %s1047_s7 = smov %s1271_s6  }
  0xfe   : >> { %s522_s5 = scalar_lea.vmem %s1232_s26, %s800_s12 [#allocation2]   ;;  %s523_s4 = scalar_lea.vmem %s505_s28, %s800_s12  }
 0x101 PF: > { %s13_s16 = sadd.s32 1, %s1020_s16   ;;  %s1260_s12 = smov %s1008_s13 }
 0x102   : > { %p10_p3 = scmp.ge.s32.totalorder %s13_s16, 4   ;;  %s1261_s13 = smov %s1115_s22 }
 0x103   : > { %s1262_s14 = smov %s1016_s15  ;;  %s1263_s15 = smov %s1265_s18 }
 0x104   :  { %12 = sbr.rel (!%p10_p3) target bundleno = 3 (0x3), region = 146 }

// kernel: _lambda_.9
= control target key start
LH: loop header
LB: loop body
LE: loop exit
PB: predicated region body
PF: predicated region fallthrough
CT: control target
= control target key end

     0   :  { %vm319_vm0 = vcmask 523264   ;;  %vm390_vm2 = vcmask 254976   ;;  %s715_s1 = inlined_call_operand.vmem [shape: bf16[576,32], index: 1, kind: input, shape index: {}]   ;;  %s716_s0 = inlined_call_operand.vmem [shape: bf16[2,576], index: 0, kind: input, shape index: {}]   ;;  %s717_s2 = inlined_call_operand.vmem [shape: f32[1,32], index: 2, kind: input, shape index: {}]   ;;  %s718_s3 = inlined_call_operand.vmem [shape: f32[2,32], index: 3, kind: output, shape index: {}]  }
   0x1   :  { %v548_v0 = vld [vmem:[%s715_s1 + $0x38] sm:$0xff]  ;;  %v547_v4 = vld [vmem:[%s715_s1 + $0x30] sm:$0xff]  ;;  %v546_v8 = vld [vmem:[%s715_s1 + $0x28] sm:$0xff] }
   0x2   :  { %v564_v1 = vld [vmem:[%s715_s1 + $0xb8] sm:$0xff]  ;;  %322 = vmatpush.bf16.msra.mxu0 %v548_v0  ;;  %v563_v5 = vld [vmem:[%s715_s1 + $0xb0] sm:$0xff]  ;;  %v562_v9 = vld [vmem:[%s715_s1 + $0xa8] sm:$0xff] }
   0x3   :  { %v556_v2 = vld [vmem:[%s715_s1 + $0x78] sm:$0xff]  ;;  %348 = vmatpush.bf16.msra.mxu2 %v564_v1  ;;  %v555_v6 = vld [vmem:[%s715_s1 + $0x70] sm:$0xff]  ;;  %v554_v10 = vld [vmem:[%s715_s1 + $0x68] sm:$0xff] }
   0x4   :  { %v572_v3 = vld [vmem:[%s715_s1 + $0xf8] sm:$0xff]  ;;  %335 = vmatpush.bf16.msra.mxu1 %v556_v2  ;;  %v571_v7 = vld [vmem:[%s715_s1 + $0xf0] sm:$0xff]  ;;  %v570_v11 = vld [vmem:[%s715_s1 + $0xe8] sm:$0xff] }
   0x5   :  { %361 = vmatpush.bf16.msra.mxu3 %v572_v3  ;;  %v545_v12 = vld [vmem:[%s715_s1 + $0x20] sm:$0xff]  ;;  %v544_v17 = vld [vmem:[%s715_s1 + $0x18] sm:$0xff]  ;;  %v543_v21 = vld [vmem:[%s715_s1 + $0x10] sm:$0xff] }
   0x6   :  { %323 = vmatpush.bf16.msra.mxu0 %v547_v4  ;;  %v561_v13 = vld [vmem:[%s715_s1 + $0xa0] sm:$0xff]  ;;  %v560_v18 = vld [vmem:[%s715_s1 + $0x98] sm:$0xff]  ;;  %v559_v22 = vld [vmem:[%s715_s1 + $0x90] sm:$0xff] }
   0x7   :  { %349 = vmatpush.bf16.msra.mxu2 %v563_v5  ;;  %v15_v14 = vld [vmem:[%s716_s0] sm:$0x1f]  ;;  %v552_v19 = vld [vmem:[%s715_s1 + $0x58] sm:$0xff]  ;;  %v551_v23 = vld [vmem:[%s715_s1 + $0x50] sm:$0xff] }
   0x8   :  { %336 = vmatpush.bf16.msra.mxu1 %v555_v6  ;;  %v553_v15 = vld [vmem:[%s715_s1 + $0x60] sm:$0xff]  ;;  %93 = vst [vmem:[#allocation1] ss:$9 sm:$0xff] %v15_v14  ;;  %v568_v20 = vld [vmem:[%s715_s1 + $0xd8] sm:$0xff]  ;;  %v567_v24 = vld [vmem:[%s715_s1 + $0xd0] sm:$0xff] }
   0x9   :  { %362 = vmatpush.bf16.msra.mxu3 %v571_v7  ;;  %v569_v16 = vld [vmem:[%s715_s1 + $0xe0] sm:$0xff]  ;;  %v542_v25 = vld [vmem:[%s715_s1 + $0x8] sm:$0xff]  ;;  %v576_v33 = vld [vmem:[%s715_s1 + $0x118] sm:$0xff] }
   0xa   :  { %324 = vmatpush.bf16.msra.mxu0 %v546_v8  ;;  %v558_v26 = vld [vmem:[%s715_s1 + $0x88] sm:$0xff]  ;;  %v541_v29 = vld [vmem:[%s715_s1] sm:$0xff]  ;;  %v575_v38 = vld [vmem:[%s715_s1 + $0x110] sm:$0xff] }
   0xb   :  { %350 = vmatpush.bf16.msra.mxu2 %v562_v9  ;;  %v550_v27 = vld [vmem:[%s715_s1 + $0x48] sm:$0xff]  ;;  %v557_v30 = vld [vmem:[%s715_s1 + $0x80] sm:$0xff] }
   0xc   :  { %337 = vmatpush.bf16.msra.mxu1 %v554_v10  ;;  %v566_v28 = vld [vmem:[%s715_s1 + $0xc8] sm:$0xff]  ;;  %v549_v31 = vld [vmem:[%s715_s1 + $0x40] sm:$0xff] }
   0xd   :  { %363 = vmatpush.bf16.msra.mxu3 %v570_v11  ;;  %v565_v32 = vld [vmem:[%s715_s1 + $0xc0] sm:$0xff]  ;;  %v574_v39 = vld [vmem:[%s715_s1 + $0x108] sm:$0xff] }
   0xe   :  { %325 = vmatpush.bf16.msra.mxu0 %v545_v12  ;;  %v573_v40 = vld [vmem:[%s715_s1 + $0x100] sm:$0xff] }
   0xf   :  { %351 = vmatpush.bf16.msra.mxu2 %v561_v13  ;;  %v94_v34 = vld [vmem:[#allocation1] sm:$0xff]  ;;  %v96_v35 = vld [vmem:[#allocation1 + $0x12] sm:$0xff]  ;;  %v95_v36 = vld [vmem:[#allocation1 + $0x9] sm:$0xff] }
  0x10   :  { %338 = vmatpush.bf16.msra.mxu1 %v553_v15  ;;  %v97_v37 = vld [vmem:[#allocation1 + $0x1b] sm:$0xff]  ;;  %v98_v41 = vld [vmem:[#allocation1 + $0x24] sm:$0xff] }
  0x11   :  { %364 = vmatpush.bf16.msra.mxu3 %v569_v16  ;;  %v577_v43 = vld [vmem:[%s717_s2] ss:$0 sm:$0xff] }
  0x12   :  { %326 = vmatpush.bf16.msra.mxu0 %v544_v17 }
  0x13   :  { %352 = vmatpush.bf16.msra.mxu2 %v560_v18 }
  0x14   :  { %339 = vmatpush.bf16.msra.mxu1 %v552_v19 }
  0x15   :  { %365 = vmatpush.bf16.msra.mxu3 %v568_v20 }
  0x16   :  { %327 = vmatpush.bf16.msra.mxu0 %v543_v21 }
  0x17   :  { %353 = vmatpush.bf16.msra.mxu2 %v559_v22 }
  0x18   :  { %340 = vmatpush.bf16.msra.mxu1 %v551_v23 }
  0x19   :  { %366 = vmatpush.bf16.msra.mxu3 %v567_v24 }
  0x1a   :  { %328 = vmatpush.bf16.msra.mxu0 %v542_v25 }
  0x1b   :  { %354 = vmatpush.bf16.msra.mxu2 %v558_v26 }
  0x1c   :  { %341 = vmatpush.bf16.msra.mxu1 %v550_v27 }
  0x1d   :  { %367 = vmatpush.bf16.msra.mxu3 %v566_v28 }
  0x1e   :  { %329 = vmatpush.bf16.msra.mxu0 %v541_v29 }
  0x1f   :  { %355 = vmatpush.bf16.msra.mxu2 %v557_v30 }
  0x20   :  { %342 = vmatpush.bf16.msra.mxu1 %v549_v31 }
  0x21   :  { %368 = vmatpush.bf16.msra.mxu3 %v565_v32  ;;  %330 = vmatmul.bf16.vlgmr.msra.gmra.mxu0 %v94_v34 }
  0x22   :  { %378 = vmatpush.bf16.msrb.mxu0 %v576_v33  ;;  %356 = vmatmul.bf16.vlgmr.msra.gmra.mxu2 %v96_v35 }
  0x23   :  { %343 = vmatmul.bf16.vlgmr.msra.gmra.mxu1 %v95_v36 }
  0x24   :  { %369 = vmatmul.bf16.vlgmr.msra.gmra.mxu3 %v97_v37 }
  0x26   :  { %379 = vmatpush.bf16.msrb.mxu0 %v575_v38 }
  0x2a   :  { %380 = vmatpush.bf16.msrb.mxu0 %v574_v39 }
  0x2e   :  { %381 = vmatpush.bf16.msrb.mxu0 %v573_v40 }
  0x31   :  { %540 = vmatmul.msk.bf16.vlgmr.msrb.gmra.mxu0 %vm319_vm0, %v98_v41 }
  0x9e   :  { %v331_v42 = vpop.f32.mrf.mxu0 }
  0x9f   :  { %v332_v45 = vadd.f32 %v577_v43, %v331_v42 }
  0xa0   :  { %v344_v44 = vpop.f32.mrf.mxu1 }
  0xa1   :  { %v345_v49 = vadd.f32 %v344_v44, %v332_v45 }
  0xa5   :  { %v357_v46 = vpop.f32.mrf.mxu2 }
  0xa6   :  { %v333_v48 = vpop.f32.mrf.mxu0  ;;  %v358_v51 = vadd.f32 %v357_v46, %v345_v49 }
  0xa7   :  { %v370_v47 = vpop.f32.mrf.mxu3 }
  0xa8   :  { %v346_v50 = vpop.f32.mrf.mxu1  ;;  %v371_v53 = vadd.f32 %v370_v47, %v358_v51 }
  0xad   :  { %v359_v52 = vpop.f32.mrf.mxu2 }
  0xae   :  { %v383_v55 = vpop.f32.mrf.mxu0 }
  0xaf   :  { %v372_v54 = vpop.f32.mrf.mxu3  ;;  %v384_v56 = vadd.f32 %v383_v55, %v371_v53 }
  0xb1   :  { %vm387_vm1 = vcmp.ge.f32.partialorder %v384_v56, 0.0  ;;  %v388_v57 = vmul.f32 0.2, %v384_v56 }
  0xb3   :  { %v389_v58 = vsel %vm387_vm1, %v384_v56, %v388_v57 }
  0xb4   :  { %391 = vst.msk [vmem:[%s718_s3] sm:$0x3] %vm390_vm2, %v389_v58 }
  0xb6   :  { %v385_v59 = vpop.f32.mrf.mxu0 }

</bundles_post_ra>
